<compile_context>
chip_gen: v6e
topology: v6e:2x2x1
jax: 0.10.0
libtpu: 0.0.40
codegen_flags: <defaults>
</compile_context>

<pallas_src>
import functools

import jax
import jax.numpy as jnp
from jax import lax
from jax.experimental import pallas as pl
from jax.experimental.pallas import tpu as pltpu

BN_EPSILON = 1e-5  # nasbench101 base_ops.BN_EPSILON


def _im2col_conv(x_ref, w_ref, col_ref, *, k, Wp, rows_out, Cin):
    """Stage im2col LHS once in VMEM, then one deep-K MXU matmul.

    x_ref:   [rows_in, Cin]       flat padded NHWC rows for one row-tile (bf16)
    w_ref:   [k*k*Cin, Coutp]     per-(tap, in-channel) weight matrix (bf16)
    col_ref: [rows_out, k*k*Cin]  VMEM scratch (bf16)
    Returns f32 [rows_out, Coutp]; row r = h*Wp + w (columns w >= W are junk).
    """
    for dh in range(k):
        for dw in range(k):
            tap = dh * k + dw
            off = dh * Wp + dw                       # static tap row offset
            col_ref[:, tap * Cin:(tap + 1) * Cin] = x_ref[off:off + rows_out, :]
    return jnp.dot(col_ref[...], w_ref[...], preferred_element_type=jnp.float32)


def _conv_stats_kernel(x_ref, w_ref, stats_ref, col_ref, *,
                       k, Wp, W, rows_out, Cin):
    """Pass 1: conv tile + masked per-channel sum / sum-of-squares (one store)."""
    y = _im2col_conv(x_ref, w_ref, col_ref, k=k, Wp=Wp, rows_out=rows_out, Cin=Cin)
    # Mask the junk columns (flattened w >= W) out of the batch statistics.
    r = lax.broadcasted_iota(jnp.int32, (rows_out, 1), 0)
    valid = lax.rem(r, Wp) < W
    ym = jnp.where(valid, y, 0.0)
    stats_ref[...] = jnp.concatenate(
        [jnp.sum(ym, axis=0, keepdims=True),          # sum
         jnp.sum(ym * y, axis=0, keepdims=True)],     # sum of squares
        axis=0)


def _conv_bn_relu_kernel(x_ref, w_ref, ss_ref, o_ref, col_ref, *,
                         k, Wp, rows_out, Cin):
    """Pass 2: recompute conv, folded BN scale/shift + ReLU, lane-dense store."""
    y = _im2col_conv(x_ref, w_ref, col_ref, k=k, Wp=Wp, rows_out=rows_out, Cin=Cin)
    o_ref[...] = jnp.maximum(y * ss_ref[0:1, :] + ss_ref[1:2, :],
                             0.0).astype(o_ref.dtype)


def dynamic_relu_conv_bn(x_nchw, weight, gamma, beta, output_size,
                         eps=BN_EPSILON, compute_dtype=jnp.bfloat16,
                         out_dtype=jnp.bfloat16, row_target=256):
    """Pallas implementation of DynamicReLUConvBN.forward.

    x_nchw: [N, Cin, H, W]   (Cin may be < weight.shape[1]; weight is sliced)
    weight: [Cout_full, Cin_full, k, k]   (k in {1, 3}), no bias
    gamma, beta: [Cout_full]
    output_size: channels kept by ChannelDropout 'fixed' (first output_size).
    out_dtype: dtype of the returned tensor (bf16 halves output HBM traffic).
    """
    N, Cin, H, W = x_nchw.shape
    Cout_full, Cin_full, kh, kw = weight.shape
    assert Cin <= Cin_full and kh == kw and kh in (1, 3)
    k = kh
    pad = 1 if k == 3 else 0
    Hp, Wp = H + 2 * pad, W + 2 * pad

    # ChannelDropout 'fixed' keeps the first out_c channels; BN is per-channel,
    # so dropped channels never influence kept ones -> fuse the slice into the
    # parameters up front.
    out_c = output_size if (Cout_full - output_size) > 0 else Cout_full
    LANE = 128
    Coutp = ((out_c + LANE - 1) // LANE) * LANE       # lane-dense channel dim

    # DynamicConv2d 'fixed': narrow in-channels to Cin; flatten to a single
    # deep-K weight matrix [(tap, cin) -> Coutp] matching the im2col layout.
    w_dyn = weight[:out_c, :Cin, :, :].astype(jnp.float32)
    w_mat = jnp.transpose(w_dyn, (2, 3, 1, 0)).reshape(k * k * Cin, out_c)
    w_mat = jnp.pad(w_mat, ((0, 0), (0, Coutp - out_c))).astype(compute_dtype)
    gamma_p = jnp.pad(gamma[:out_c].astype(jnp.float32), (0, Coutp - out_c))
    beta_p = jnp.pad(beta[:out_c].astype(jnp.float32), (0, Coutp - out_c))

    # Row tiling over output-image rows: largest divisor of H whose flat row
    # count fits the row budget (keeps both v7x TCs busy at small N and bounds
    # per-step VMEM if H*W grows).
    divisors = [d for d in range(1, H + 1) if H % d == 0]
    fitting = [d for d in divisors if d * Wp <= row_target]
    TH = max(fitting) if fitting else 1
    n_tiles = H // TH
    rows_tile = TH * Wp                       # conv rows computed per grid step
    max_off = (k - 1) * Wp + (k - 1)          # largest tap offset (halo)
    rows_in_tile = -(-(rows_tile + max_off) // 8) * 8

    # NCHW -> flat padded NHWC rows (bf16), then overlapping halo row-tiles.
    # TODO(synk): if the surrounding graph can consume NHWC/bf16, the final
    # transpose below can be skipped (wrapper layout passes rival kernel time).
    x = jnp.transpose(x_nchw, (0, 2, 3, 1)).astype(compute_dtype)
    xp = jnp.pad(x, ((0, 0), (pad, pad), (pad, pad), (0, 0)))
    xflat = xp.reshape(N, Hp * Wp, Cin)
    total_rows = (n_tiles - 1) * rows_tile + rows_in_tile
    xflat = jnp.pad(xflat, ((0, 0), (0, total_rows - Hp * Wp), (0, 0)))
    xb = jnp.stack([xflat[:, t * rows_tile:t * rows_tile + rows_in_tile, :]
                    for t in range(n_tiles)], axis=1)   # [N, T, rows_in, Cin]

    cparams = pltpu.CompilerParams(
        dimension_semantics=("parallel", "parallel"),   # batch x row-tile
        vmem_limit_bytes=32 * 1024 * 1024)   # well under v7x's 64 MiB VMEM
    # (On v5e/v6e, if xprof shows exposed DMA in pass 2, the x/output specs
    #  can additionally use pipeline_mode=pl.Buffered(3).)

    # ---- Pass 1: conv + per-(batch, row-tile) partial BN statistics --------
    stats = pl.pallas_call(
        functools.partial(_conv_stats_kernel, k=k, Wp=Wp, W=W,
                          rows_out=rows_tile, Cin=Cin),
        out_shape=jax.ShapeDtypeStruct((N, n_tiles, 2, Coutp), jnp.float32),
        grid=(N, n_tiles),
        in_specs=[
            pl.BlockSpec((None, None, rows_in_tile, Cin), lambda n, t: (n, t, 0, 0)),
            pl.BlockSpec((k * k * Cin, Coutp), lambda n, t: (0, 0)),
        ],
        out_specs=pl.BlockSpec((None, None, 2, Coutp), lambda n, t: (n, t, 0, 0)),
        scratch_shapes=[pltpu.VMEM((rows_tile, k * k * Cin), compute_dtype)],
        compiler_params=cparams,
    )(xb, w_mat)

    # Tiny global combine: BN statistics stay global over all N*H*W pixels.
    # One-pass E[x^2]-E[x]^2 in f32 with a >=0 clamp (documented tolerance).
    count = float(N * H * W)
    mean = jnp.sum(stats[:, :, 0, :], axis=(0, 1)) / count
    var = jnp.maximum(jnp.sum(stats[:, :, 1, :], axis=(0, 1)) / count
                      - mean * mean, 0.0)
    inv_std = lax.rsqrt(var + eps)
    scale = gamma_p * inv_std
    shift = beta_p - mean * scale
    ss = jnp.stack([scale, shift], axis=0)    # single resident (2, Coutp) block

    # ---- Pass 2: recompute conv, folded BN + ReLU, lane-dense bf16 output --
    out_flat = pl.pallas_call(
        functools.partial(_conv_bn_relu_kernel, k=k, Wp=Wp,
                          rows_out=rows_tile, Cin=Cin),
        out_shape=jax.ShapeDtypeStruct((N, n_tiles, rows_tile, Coutp), out_dtype),
        grid=(N, n_tiles),
        in_specs=[
            pl.BlockSpec((None, None, rows_in_tile, Cin), lambda n, t: (n, t, 0, 0)),
            pl.BlockSpec((k * k * Cin, Coutp), lambda n, t: (0, 0)),
            pl.BlockSpec((2, Coutp), lambda n, t: (0, 0)),
        ],
        out_specs=pl.BlockSpec((None, None, rows_tile, Coutp),
                               lambda n, t: (n, t, 0, 0)),
        scratch_shapes=[pltpu.VMEM((rows_tile, k * k * Cin), compute_dtype)],
        compiler_params=cparams,
    )(xb, w_mat, ss)

    # Drop junk width columns and padded channels on the contiguous trailing
    # dims (NHWC layout), then transpose back to NCHW.
    out = out_flat.reshape(N, H, Wp, Coutp)[:, :, :W, :out_c]
    return jnp.transpose(out, (0, 3, 1, 2))


def _reference(x_nchw, weight, gamma, beta, output_size, eps=BN_EPSILON,
               compute_dtype=jnp.bfloat16):
    """Plain-JAX reference (same bf16 conv operands, f32 accumulation / BN)."""
    Cin = x_nchw.shape[1]
    w_dyn = weight[:, :Cin, :, :]
    pad = 1 if weight.shape[2] == 3 else 0
    y = lax.conv_general_dilated(
        x_nchw.astype(compute_dtype), w_dyn.astype(compute_dtype),
        window_strides=(1, 1), padding=[(pad, pad), (pad, pad)],
        dimension_numbers=("NCHW", "OIHW", "NCHW"),
        preferred_element_type=jnp.float32)
    mean = jnp.mean(y, axis=(0, 2, 3), keepdims=True)
    var = jnp.mean(jnp.square(y - mean), axis=(0, 2, 3), keepdims=True)
    y = (y - mean) * lax.rsqrt(var + eps)
    y = y * gamma.reshape(1, -1, 1, 1) + beta.reshape(1, -1, 1, 1)
    y = jnp.maximum(y, 0.0)
    if y.shape[1] - output_size > 0:
        y = y[:, :output_size]
    return y


if __name__ == "__main__":
    key = jax.random.PRNGKey(0)
    k_w, k_x = jax.random.split(key)

    # Module config: kernel_size=3, full_input_size=8, full_output_size=8.
    kernel_size, full_in, full_out = 3, 8, 8
    # Runtime input uses fewer channels than full_in (dynamic conv) and we
    # request fewer output channels than full_out (channel dropout).
    N, Cin, H, W = 2, 4, 16, 16
    output_size = 6

    weight = 0.1 * jax.random.normal(
        k_w, (full_out, full_in, kernel_size, kernel_size), dtype=jnp.float32)
    gamma = jnp.ones((full_out,), dtype=jnp.float32)   # BN affine default init
    beta = jnp.zeros((full_out,), dtype=jnp.float32)
    x = jax.random.normal(k_x, (N, Cin, H, W), dtype=jnp.float32)

    out = jax.block_until_ready(
        dynamic_relu_conv_bn(x, weight, gamma, beta, output_size))
    ref = jax.block_until_ready(
        _reference(x, weight, gamma, beta, output_size))

    assert out.shape == (N, output_size, H, W), out.shape
    out_f = out.astype(jnp.float32)
    max_err = float(jnp.max(jnp.abs(out_f - ref)))
    # Output is bf16 (bandwidth optimization) -> tolerance covers bf16 rounding.
    assert jnp.allclose(out_f, ref, atol=3e-2, rtol=3e-2), max_err

    print("KERNEL_OK")
</pallas_src>

<mosaic_0001>
module attributes {stable_mosaic.version = 11 : i64} {
  func.func @_conv_stats_kernel(%arg0: i32, %arg1: i32, %arg2: memref<1x1x184x4xbf16, #tpu.memory_space<vmem>>, %arg3: memref<36x128xbf16, #tpu.memory_space<vmem>>, %arg4: memref<1x1x2x128xf32, #tpu.memory_space<vmem>>, %arg5: memref<144x36xbf16, #tpu.memory_space<vmem>>) attributes {dimension_semantics = [#tpu.dimension_semantics<parallel>, #tpu.dimension_semantics<parallel>], iteration_bounds = array<i64: 2, 2>, scalar_prefetch = 0 : i64, scratch_operands = 1 : i64, tpu.core_type = #tpu.core_type<tc>, window_params = [{transform_indices = @transform_0, window_bounds = array<i64: 1, 1, 184, 4>}, {pipeline_mode = #tpu.pipeline_mode<synchronous>, transform_indices = @transform_1, window_bounds = array<i64: 36, 128>}, {transform_indices = @transform_2, window_bounds = array<i64: 1, 1, 2, 128>}]} {
    %c0 = arith.constant 0 : index
    %c0_0 = arith.constant 0 : index
    %c0_1 = arith.constant 0 : index
    %c0_2 = arith.constant 0 : index
    %0 = vector.load %arg2[%c0, %c0_0, %c0_1, %c0_2] : memref<1x1x184x4xbf16, #tpu.memory_space<vmem>>, vector<1x1x144x4xbf16>
    %1 = vector.shape_cast %0 : vector<1x1x144x4xbf16> to vector<144x4xbf16>
    %c0_3 = arith.constant 0 : index
    %c0_4 = arith.constant 0 : index
    %2 = vector.load %arg5[%c0_3, %c0_4] : memref<144x36xbf16, #tpu.memory_space<vmem>>, vector<144x4xbf16>
    tpu.vector_store %arg5[%c0_3, %c0_4], %1 {strides = array<i32>} : memref<144x36xbf16, #tpu.memory_space<vmem>>, vector<144x4xbf16>,
    %c0_5 = arith.constant 0 : index
    %c0_6 = arith.constant 0 : index
    %c1 = arith.constant 1 : index
    %c0_7 = arith.constant 0 : index
    %3 = vector.load %arg2[%c0_5, %c0_6, %c1, %c0_7] : memref<1x1x184x4xbf16, #tpu.memory_space<vmem>>, vector<1x1x144x4xbf16>
    %4 = vector.shape_cast %3 : vector<1x1x144x4xbf16> to vector<144x4xbf16>
    %c0_8 = arith.constant 0 : index
    %c4 = arith.constant 4 : index
    %5 = vector.load %arg5[%c0_8, %c4] : memref<144x36xbf16, #tpu.memory_space<vmem>>, vector<144x4xbf16>
    tpu.vector_store %arg5[%c0_8, %c4], %4 {strides = array<i32>} : memref<144x36xbf16, #tpu.memory_space<vmem>>, vector<144x4xbf16>,
    %c0_9 = arith.constant 0 : index
    %c0_10 = arith.constant 0 : index
    %c2 = arith.constant 2 : index
    %c0_11 = arith.constant 0 : index
    %6 = vector.load %arg2[%c0_9, %c0_10, %c2, %c0_11] : memref<1x1x184x4xbf16, #tpu.memory_space<vmem>>, vector<1x1x144x4xbf16>
    %7 = vector.shape_cast %6 : vector<1x1x144x4xbf16> to vector<144x4xbf16>
    %c0_12 = arith.constant 0 : index
    %c8 = arith.constant 8 : index
    %8 = vector.load %arg5[%c0_12, %c8] : memref<144x36xbf16, #tpu.memory_space<vmem>>, vector<144x4xbf16>
    tpu.vector_store %arg5[%c0_12, %c8], %7 {strides = array<i32>} : memref<144x36xbf16, #tpu.memory_space<vmem>>, vector<144x4xbf16>,
    %c0_13 = arith.constant 0 : index
    %c0_14 = arith.constant 0 : index
    %c18 = arith.constant 18 : index
    %c0_15 = arith.constant 0 : index
    %9 = vector.load %arg2[%c0_13, %c0_14, %c18, %c0_15] : memref<1x1x184x4xbf16, #tpu.memory_space<vmem>>, vector<1x1x144x4xbf16>
    %10 = vector.shape_cast %9 : vector<1x1x144x4xbf16> to vector<144x4xbf16>
    %c0_16 = arith.constant 0 : index
    %c12 = arith.constant 12 : index
    %11 = vector.load %arg5[%c0_16, %c12] : memref<144x36xbf16, #tpu.memory_space<vmem>>, vector<144x4xbf16>
    tpu.vector_store %arg5[%c0_16, %c12], %10 {strides = array<i32>} : memref<144x36xbf16, #tpu.memory_space<vmem>>, vector<144x4xbf16>,
    %c0_17 = arith.constant 0 : index
    %c0_18 = arith.constant 0 : index
    %c19 = arith.constant 19 : index
    %c0_19 = arith.constant 0 : index
    %12 = vector.load %arg2[%c0_17, %c0_18, %c19, %c0_19] : memref<1x1x184x4xbf16, #tpu.memory_space<vmem>>, vector<1x1x144x4xbf16>
    %13 = vector.shape_cast %12 : vector<1x1x144x4xbf16> to vector<144x4xbf16>
    %c0_20 = arith.constant 0 : index
    %c16 = arith.constant 16 : index
    %14 = vector.load %arg5[%c0_20, %c16] : memref<144x36xbf16, #tpu.memory_space<vmem>>, vector<144x4xbf16>
    tpu.vector_store %arg5[%c0_20, %c16], %13 {strides = array<i32>} : memref<144x36xbf16, #tpu.memory_space<vmem>>, vector<144x4xbf16>,
    %c0_21 = arith.constant 0 : index
    %c0_22 = arith.constant 0 : index
    %c20 = arith.constant 20 : index
    %c0_23 = arith.constant 0 : index
    %15 = vector.load %arg2[%c0_21, %c0_22, %c20, %c0_23] : memref<1x1x184x4xbf16, #tpu.memory_space<vmem>>, vector<1x1x144x4xbf16>
    %16 = vector.shape_cast %15 : vector<1x1x144x4xbf16> to vector<144x4xbf16>
    %c0_24 = arith.constant 0 : index
    %c20_25 = arith.constant 20 : index
    %17 = vector.load %arg5[%c0_24, %c20_25] : memref<144x36xbf16, #tpu.memory_space<vmem>>, vector<144x4xbf16>
    tpu.vector_store %arg5[%c0_24, %c20_25], %16 {strides = array<i32>} : memref<144x36xbf16, #tpu.memory_space<vmem>>, vector<144x4xbf16>,
    %c0_26 = arith.constant 0 : index
    %c0_27 = arith.constant 0 : index
    %c36 = arith.constant 36 : index
    %c0_28 = arith.constant 0 : index
    %18 = vector.load %arg2[%c0_26, %c0_27, %c36, %c0_28] : memref<1x1x184x4xbf16, #tpu.memory_space<vmem>>, vector<1x1x144x4xbf16>
    %19 = vector.shape_cast %18 : vector<1x1x144x4xbf16> to vector<144x4xbf16>
    %c0_29 = arith.constant 0 : index
    %c24 = arith.constant 24 : index
    %20 = vector.load %arg5[%c0_29, %c24] : memref<144x36xbf16, #tpu.memory_space<vmem>>, vector<144x4xbf16>
    tpu.vector_store %arg5[%c0_29, %c24], %19 {strides = array<i32>} : memref<144x36xbf16, #tpu.memory_space<vmem>>, vector<144x4xbf16>,
    %c0_30 = arith.constant 0 : index
    %c0_31 = arith.constant 0 : index
    %c37 = arith.constant 37 : index
    %c0_32 = arith.constant 0 : index
    %21 = vector.load %arg2[%c0_30, %c0_31, %c37, %c0_32] : memref<1x1x184x4xbf16, #tpu.memory_space<vmem>>, vector<1x1x144x4xbf16>
    %22 = vector.shape_cast %21 : vector<1x1x144x4xbf16> to vector<144x4xbf16>
    %c0_33 = arith.constant 0 : index
    %c28 = arith.constant 28 : index
    %23 = vector.load %arg5[%c0_33, %c28] : memref<144x36xbf16, #tpu.memory_space<vmem>>, vector<144x4xbf16>
    tpu.vector_store %arg5[%c0_33, %c28], %22 {strides = array<i32>} : memref<144x36xbf16, #tpu.memory_space<vmem>>, vector<144x4xbf16>,
    %c0_34 = arith.constant 0 : index
    %c0_35 = arith.constant 0 : index
    %c38 = arith.constant 38 : index
    %c0_36 = arith.constant 0 : index
    %24 = vector.load %arg2[%c0_34, %c0_35, %c38, %c0_36] : memref<1x1x184x4xbf16, #tpu.memory_space<vmem>>, vector<1x1x144x4xbf16>
    %25 = vector.shape_cast %24 : vector<1x1x144x4xbf16> to vector<144x4xbf16>
    %c0_37 = arith.constant 0 : index
    %c32 = arith.constant 32 : index
    %26 = vector.load %arg5[%c0_37, %c32] : memref<144x36xbf16, #tpu.memory_space<vmem>>, vector<144x4xbf16>
    tpu.vector_store %arg5[%c0_37, %c32], %25 {strides = array<i32>} : memref<144x36xbf16, #tpu.memory_space<vmem>>, vector<144x4xbf16>,
    %c0_38 = arith.constant 0 : index
    %c0_39 = arith.constant 0 : index
    %27 = vector.load %arg5[%c0_38, %c0_39] : memref<144x36xbf16, #tpu.memory_space<vmem>>, vector<144x36xbf16>
    %c0_40 = arith.constant 0 : index
    %c0_41 = arith.constant 0 : index
    %28 = vector.load %arg3[%c0_40, %c0_41] : memref<36x128xbf16, #tpu.memory_space<vmem>>, vector<36x128xbf16>
    %cst = arith.constant dense<0.000000e+00> : vector<144x128xf32>
    %29 = tpu.matmul %27, %28, %cst {dimension_numbers = #tpu.dot_dimension_numbers<[1], [0], [0], [1], [0, 0, 1, 1], [], []>} : vector<144x36xbf16>, vector<36x128xbf16>, vector<144x128xf32> -> vector<144x128xf32>
    %30 = tpu.iota {dimensions = array<i32: 0>} : vector<144x1xi32>
    %c18_i32 = arith.constant 18 : i32
    %31 = vector.broadcast %c18_i32 : i32 to vector<144x1xi32>
    %32 = arith.remsi %30, %31 : vector<144x1xi32>
    %c16_i32 = arith.constant 16 : i32
    %33 = vector.broadcast %c16_i32 : i32 to vector<144x1xi32>
    %34 = arith.cmpi slt, %32, %33 : vector<144x1xi32>
    %cst_42 = arith.constant 0.000000e+00 : f32
    %35 = vector.shape_cast %34 : vector<144x1xi1> to vector<144x1xi1>
    %36 = vector.broadcast %35 : vector<144x1xi1> to vector<144x128xi1>
    %37 = vector.broadcast %cst_42 : f32 to vector<144x128xf32>
    %38 = arith.select %36, %29, %37 : vector<144x128xi1>, vector<144x128xf32>
    %cst_43 = arith.constant dense<0.000000e+00> : vector<128xf32>
    %39 = vector.multi_reduction <add>, %38, %cst_43 [0] : vector<144x128xf32> to vector<128xf32>
    %40 = vector.shape_cast %39 : vector<128xf32> to vector<1x128xf32>
    %41 = arith.mulf %38, %29 : vector<144x128xf32>
    %cst_44 = arith.constant dense<0.000000e+00> : vector<128xf32>
    %42 = vector.multi_reduction <add>, %41, %cst_44 [0] : vector<144x128xf32> to vector<128xf32>
    %43 = vector.shape_cast %42 : vector<128xf32> to vector<1x128xf32>
    %44 = tpu.concatenate %40, %43 in 0 : vector<1x128xf32>, vector<1x128xf32> -> vector<2x128xf32>
    %c0_45 = arith.constant 0 : index
    %c0_46 = arith.constant 0 : index
    %c0_47 = arith.constant 0 : index
    %c0_48 = arith.constant 0 : index
    %45 = vector.load %arg4[%c0_45, %c0_46, %c0_47, %c0_48] : memref<1x1x2x128xf32, #tpu.memory_space<vmem>>, vector<1x1x2x128xf32>
    %46 = vector.shape_cast %45 : vector<1x1x2x128xf32> to vector<2x128xf32>
    %47 = vector.shape_cast %44 : vector<2x128xf32> to vector<1x1x2x128xf32>
    tpu.vector_store %arg4[%c0_45, %c0_46, %c0_47, %c0_48], %47 {strides = array<i32>} : memref<1x1x2x128xf32, #tpu.memory_space<vmem>>, vector<1x1x2x128xf32>,
    return
  }
  func.func @transform_0(%arg0: i32, %arg1: i32) -> (i32, i32, i32, i32) {
    %c0_i32 = arith.constant 0 : i32
    %c0_i32_0 = arith.constant 0 : i32
    %c0_i32_1 = arith.constant 0 : i32
    return %arg0, %arg1, %c0_i32, %c0_i32_0 : i32, i32, i32, i32
  }
  func.func @transform_1(%arg0: i32, %arg1: i32) -> (i32, i32) {
    %c0_i32 = arith.constant 0 : i32
    %c0_i32_0 = arith.constant 0 : i32
    %c0_i32_1 = arith.constant 0 : i32
    return %c0_i32, %c0_i32_0 : i32, i32
  }
  func.func @transform_2(%arg0: i32, %arg1: i32) -> (i32, i32, i32, i32) {
    %c0_i32 = arith.constant 0 : i32
    %c0_i32_0 = arith.constant 0 : i32
    %c0_i32_1 = arith.constant 0 : i32
    return %arg0, %arg1, %c0_i32, %c0_i32_0 : i32, i32, i32, i32
  }
}

</mosaic_0001>

<bundles_post_ra>
// kernel: tpu_custom_call.1
= control target key start
LH: loop header
LB: loop body
LE: loop exit
PB: predicated region body
PF: predicated region fallthrough
CT: control target
= control target key end

     0   :  { %7 = vsyncpa [#allocation4], 0  ;;  %s4434_s0 = inlined_call_operand.vmem [shape: bf16[2,2,184,4], index: 0, kind: input, shape index: {}]   ;;  %s4435_s1 = inlined_call_operand.vmem [shape: bf16[36,128], index: 1, kind: input, shape index: {}]   ;;  %s4436_s2 = inlined_call_operand.hbm [shape: f32[2,2,2,128], index: 2, kind: output, shape index: {}]  }
   0x1   :  { %9 = vsyncpa [#allocation4 + $0x1], 0  ;;  %s2914_s9 = smov 0   ;;  %s2916_s10 = smov 0  }
   0x2   :  { %s2918_s11 = smov 0   ;;  %s2920_s12 = smov 0  }
   0x3   :  { %s2922_s13 = smov 0   ;;  %s2924_s14 = smov 0  }
   0x4   :  { %s2926_s15 = smov 0   ;;  %s2928_s16 = smov 0  }
   0x5 LB: > { %s2565_s17 = sadd.s32 4294967295, %s2886_s16   ;;  %s2566_s18 = sadd.s32 4294967294, %s2886_s16   ;;  %s2886_s16 = sphi %s2928_s16, %s15_s16   ;;  %s2882_s15 = sphi %s2926_s15, %s4503_s15   ;;  %s2878_s14 = sphi %s2924_s14, %s4502_s14   ;;  %s2874_s13 = sphi %s2922_s13, %s4501_s13   ;;  %s2870_s12 = sphi %s2920_s12, %s4500_s12   ;;  %s2866_s11 = sphi %s2918_s11, %s4499_s11   ;;  %s2862_s10 = sphi %s2916_s10, %s4498_s10   ;;  %s2858_s9 = sphi %s2914_s9, %s4497_s9  }
   0x6   : > { %s24_s19 = sadd.s32 1, %s2878_s14  ;;  %s27_s20 = sadd.s32 1, %s2882_s15 }
   0x7   : > { %p25_p0 = scmp.ge.s32.totalorder %s24_s19, 2  ;;  %p95_p1 = scmp.ne.s32.totalorder %s2866_s11, %s2862_s10 }
   0x8   : > { %p96_p2 = scmp.eq.s32.totalorder %s2565_s17, 3  ;;  %p101_p5 = scmp.ne.s32.totalorder %s2862_s10, %s2858_s9 }
   0x9   : > { %s4505_s19 = smov (%p25_p0, %s24_s19), 0  ;;  %s4507_s20 = smov (!%p25_p0, %s27_s20), %s2882_s15 }
   0xa   : > { %s81_s21 = ssub.s32 %s2878_s14, %s4505_s19  ;;  %p2965_p3 = por %p96_p2, %p95_p1 }
   0xb   : > { %p29_p4 = scmp.ge.s32.totalorder %s4507_s20, 2  ;;  %p102_p6 = scmp.eq.s32.totalorder %s2566_s18, 3 }
   0xc   : > { %p2569_p7 = scmp.ge.s32.totalorder %s2886_s16, 1  ;;  %p135_p9 = scmp.lt.s32.totalorder %s2886_s16, 5 }
   0xd   : > { %s4509_s20 = smov (%p29_p4, %s4507_s20), 0  ;;  %p2974_p8 = por %p102_p6, %p101_p5 }
   0xe   : > { %s80_s24 = ssub.s32 %s2882_s15, %s4509_s20  ;;  %s85_s25 = sadd.s32 1, %s2866_s11 }
   0xf   : > { %s82_s26 = sor.u32 %s81_s21, %s80_s24  ;;  %p136_p10 = pnand %p2569_p7, %p135_p9 }
  0x10   : > { %p83_p11 = scmp.eq.s32.totalorder %s82_s26, 0  ;;  %p161_p12 = scmp.lt.s32.totalorder (!%p136_p10), %s2874_s13, 1 }
  0x11   : > { %139 = sbr.rel (%p136_p10) target bundleno = 671 (0x29f), region = 28  ;;  %p163_p13 = scmp.lt.s32.totalorder (!%p136_p10), %s2870_s12, 1 }
  0x12   : > { %s2983_s27 = scalar_select %p83_p11, %s2866_s11, %s85_s25  }
  0x13   : > { %s2888_s17 = smov (!%p136_p10), 12   ;;  %s2889_s18 = smov (!%p136_p10), 8  }
  0x14   : > { %s2890_s21 = smov (!%p136_p10), 20   ;;  %s2891_s24 = smov (!%p136_p10), 4  }
  0x15   : > { %s2892_s25 = smov (!%p136_p10), 16   ;;  %s2893_s26 = smov (!%p136_p10), 24  }
  0x16   : > { %s162_s28 = scalar_select %p161_p12, %s2874_s13, 1  ;;  %vm525_vm0 = vcmask 1042432   ;;  %vm526_vm1 = vcmask 1046532   ;;  %vm1143_vm3 = vcmask 1041408   ;;  %vm1144_vm4 = vcmask 1045508  }
  0x17   : > { %s164_s29 = scalar_select %p163_p13, %s2870_s12, 1  ;;  %vm2994_vm2 = vmor %vm525_vm0, %vm526_vm1  ;;  %vm227_vm5 = vsmask.f32 3328  ;;  %vm228_vm6 = vsmask.f32 7440  ;;  %vm4442_vm12 = vcmask 1040384  }
  0x18   : > { %s2664_s30 = smul.u32 46, %s162_s28  ;;  %vm3005_vm7 = vmor %vm1143_vm3, %vm1144_vm4  ;;  %vm841_vm8 = vsmask.f32 2304  ;;  %vm842_vm9 = vsmask.f32 6416  ;;  %vm1762_vm0 = vcmask 1044484  }
  0x19   : > { %s2663_s3 = smul.u32 23, %s164_s29  ;;  %vm3050_vm10 = vmor %vm227_vm5, %vm228_vm6  ;;  %vm1459_vm13 = vsmask.f32 1280  ;;  %vm1460_vm14 = vsmask.f32 5392  ;;  %s2894_s28 = smov 28  }
  0x1a   : > { %vm3072_vm11 = vmor %vm841_vm8, %vm842_vm9  ;;  %s2895_s29 = smov 32   ;;  %vm4444_vm4 = vcmask 27648   ;;  %vm468_vm5 = vcmask 60448   ;;  %vm637_vm6 = vcmask 93248   ;;  %vm803_vm8 = vcmask 126048  }
  0x1b   : > { %s167_s4 = sadd.s32 %s2664_s30, %s2663_s3  ;;  %vm3115_vm15 = vmor %vm1459_vm13, %vm1460_vm14  ;;  %vm1086_vm9 = vcmask 158848   ;;  %vm1255_vm13 = vcmask 191648   ;;  %vm1421_vm14 = vcmask 224448   ;;  %s2898_s3 = smov [#allocation3]  }
  0x1c   : > { %s2571_s5 = sshll.u32 %s167_s4, 2  ;;  %vm3130_vm1 = vmor %vm4442_vm12, %vm1762_vm0  ;;  %vm4445_vm0 = vcmask 257248   ;;  %vm4443_vm12 = vcmask 290048   ;;  %s2798_s4 = sshll.u32 %s2898_s3, 4  ;;  %s2799_s4 = int_to_ptr.vmem [resolvable:$false] %s2798_s4 }
  0x1d   : > { %s2992_s8 = scalar_lea.vmem %s4434_s0, %s2571_s5  ;;  %s2800_s5 = scalar_lea.vmem %s2799_s4, 64 }
  0x1e   : > { %v656_v1 = vld [vmem:[%s2992_s8 + $0x8] sm:$0xe]  ;;  %v657_v2 = vld [vmem:[%s2992_s8 + $0xc] sm:$0xf]  ;;  %v487_v3 = vld [vmem:[%s2992_s8] sm:$0xe] }
  0x1f   : > { %v2573_v4 = vrot.slane %v656_v1, 9  ;;  %v696_v5 = vrot.slane %v657_v2, 5  ;;  %v488_v6 = vld [vmem:[%s2992_s8 + $0x4] sm:$0xf]  ;;  %v2572_v7 = vrot.slane %v487_v3, 9 }
  0x20   : > { %v530_v8 = vrot.slane %v488_v6, 5  ;;  %v1105_v9 = vld [vmem:[%s2992_s8 + $0x8] sm:$0xc]  ;;  %v1106_v10 = vld [vmem:[%s2992_s8 + $0xc] sm:$0xf] }
  0x21   : > { %v697_v12 = vsel %vm2994_vm2, %v2573_v4, %v696_v5  ;;  %v2574_v13 = vrot.slane %v1105_v9, 10  ;;  %v1148_v14 = vrot.slane %v1106_v10, 6  ;;  %v3012_v15 = vld [vmem:[%s2992_s8 + $0x8] sm:$0xf]  ;;  %v3015_v16 = vld [vmem:[%s2992_s8 + $0x10] sm:$0xf] }
  0x22   : > { %749 = vrot.lane.b32.xlu0 %v697_v12, %s2888_s17  ;;  %v531_v17 = vsel %vm2994_vm2, %v2572_v7, %v530_v8  ;;  %v532_v18 = vrot.slane %v530_v8, 4  ;;  %v533_v19 = vrot.slane %v3012_v15, 5  ;;  %v698_v20 = vrot.slane %v696_v5, 4  ;;  %v208_v21 = vld [vmem:[%s2992_s8] sm:$0xf] }
  0x23   : > { %583 = vrot.lane.b32.xlu1 %v531_v17, %s2889_s18  ;;  %v1149_v22 = vsel %vm3005_vm7, %v2574_v13, %v1148_v14  ;;  %v699_v23 = vrot.slane %v3015_v16, 5  ;;  %v209_v24 = vld [vmem:[%s2992_s8 + $0x4] sm:$0xf]  ;;  %v231_v25 = vshrl.u32 %v208_v21, 16  ;;  %v234_v26 = vshll.u32 %v208_v21, 16 }
  0x24   : > { %v534_v27 = vsel %vm2994_vm2, %v532_v18, %v533_v19  ;;  %v240_v28 = vshll.u32 %v209_v24, 16  ;;  %v244_v29 = vshrl.u32 %v209_v24, 16  ;;  %v3032_v30 = vld [vmem:[%s2992_s8 + $0x10] sm:$0xf]  ;;  %v1150_v33 = vrot.slane %v1148_v14, 4 }
  0x25   : > { %v233_v31 = vrot.slane %v231_v25, 4  ;;  %v236_v32 = vrot.slane %v234_v26, 5  ;;  %v3035_v34 = vld [vmem:[%s2992_s8 + $0x8] sm:$0xf]  ;;  %v1151_v36 = vrot.slane %v3032_v30, 6  ;;  %v700_v40 = vsel %vm2994_vm2, %v698_v20, %v699_v23 }
  0x26   : > { %1201 = vrot.lane.b32.xlu0 %v1149_v22, %s2890_s21  ;;  %v242_v35 = vrot.slane %v240_v28, 5  ;;  %v246_v37 = vrot.slane %v244_v29, 4  ;;  %v250_v38 = vshll.u32 %v3035_v34, 16  ;;  %v823_v39 = vld [vmem:[%s2992_s8 + $0xc] sm:$0xf] }
  0x27   : > { %585 = vrot.lane.b32.xlu1 %v534_v27, %s2889_s18  ;;  %v237_v41 = vor.u32 %v236_v32, %v233_v31  ;;  %v824_v42 = vld [vmem:[%s2992_s8 + $0x10] sm:$0xf]  ;;  %v854_v43 = vshrl.u32 %v823_v39, 16  ;;  %v857_v44 = vshll.u32 %v823_v39, 16  ;;  %v822_v45 = vld [vmem:[%s2992_s8 + $0x8] sm:$0xe]  ;;  %v1152_v3 = vsel %vm3005_vm7, %v1150_v33, %v1151_v36 }
  0x28   : > { %v247_v47 = vor.u32 %v246_v37, %v242_v35  ;;  %v3054_v48 = vrot.slane %v250_v38, 5  ;;  %v864_v49 = vshrl.u32 %v824_v42, 16  ;;  %v867_v50 = vshll.u32 %v824_v42, 16  ;;  %v3057_v51 = vld [vmem:[%s2992_s8 + $0x14] sm:$0xf] }
  0x29   : > { %v238_v52 = vrot.slane %v237_v41, 4  ;;  %v856_v53 = vrot.slane %v854_v43, 5  ;;  %v859_v54 = vrot.slane %v857_v44, 6  ;;  %v845_v55 = vshrl.u32 %v822_v45, 16  ;;  %v1441_v1 = vld [vmem:[%s2992_s8 + $0x14] sm:$0xf] }
  0x2a   : > { %v248_v56 = vrot.slane %v247_v47, 4  ;;  %v866_v57 = vrot.slane %v864_v49, 5  ;;  %v869_v58 = vrot.slane %v867_v50, 6  ;;  %v848_v59 = vshll.u32 %v822_v45, 16  ;;  %v1442_v2 = vld [vmem:[%s2992_s8 + $0x18] sm:$0xf] }
  0x2b   : > { %751 = vrot.lane.b32.xlu1 %v700_v40, %s2888_s17  ;;  %v243_v60 = vsel %vm3050_vm10, %v238_v52, %v242_v35  ;;  %v860_v61 = vor.u32 %v859_v54, %v856_v53  ;;  %v847_v62 = vrot.slane %v845_v55, 5  ;;  %v1314_v63 = vrot.slane %v3057_v51, 6  ;;  %v3079_v7 = vld [vmem:[%s2992_s8 + $0x18] sm:$0xf]  ;;  %v1274_v10 = vld [vmem:[%s2992_s8 + $0x10] sm:$0xc] }
  0x2c   : > { %414 = vrot.lane.b32.xlu0 %v243_v60, %s2891_s24  ;;  %v3076_v5 = vor.u32 %v869_v58, %v866_v57  ;;  %v850_v6 = vrot.slane %v848_v59, 6  ;;  %v253_v8 = vsel %vm3050_vm10, %v248_v56, %v3054_v48  ;;  %v1472_v12 = vshrl.u32 %v1441_v1, 16  ;;  %v1440_v20 = vld [vmem:[%s2992_s8 + $0x10] sm:$0xc]  ;;  %v3092_v26 = vld [vmem:[%s2992_s8 + $0x14] sm:$0xf] }
  0x2d   : > { %v862_v9 = vrot.slane %v860_v61, 4  ;;  %v1475_v14 = vshll.u32 %v1441_v1, 16  ;;  %v1482_v17 = vshrl.u32 %v1442_v2, 16  ;;  %v1485_v18 = vshll.u32 %v1442_v2, 16  ;;  %v211_v32 = vld [vmem:[%s2992_s8 + $0xc] sm:$0xf] }
  0x2e   : > { %v851_v13 = vor.u32 %v850_v6, %v847_v62  ;;  %v1316_v22 = vrot.slane %v1314_v63, 4  ;;  %v1317_v24 = vrot.slane %v3079_v7, 6  ;;  %v1474_v25 = vrot.slane %v1472_v12, 6  ;;  %v3109_v49 = vld [vmem:[%s2992_s8 + $0x18] sm:$0xf] }
  0x2f   : > { %1203 = vrot.lane.b32.xlu1 %v1152_v3, %s2890_s21  ;;  %v871_v21 = vsel %vm3072_vm11, %v862_v9, %v3076_v5  ;;  %v1477_v28 = vrot.slane %v1475_v14, 7  ;;  %v1484_v29 = vrot.slane %v1482_v17, 6  ;;  %v1487_v31 = vrot.slane %v1485_v18, 7  ;;  %v3120_v54 = vld [vmem:[%s2992_s8 + $0x10] sm:$0xf] }
  0x30   : > { %416 = vrot.lane.b32.xlu0 %v253_v8, %s2891_s24  ;;  %v852_v27 = vrot.slane %v851_v13, 4  ;;  %v2575_v33 = vrot.slane %v1274_v10, 10  ;;  %v1463_v35 = vshrl.u32 %v1440_v20, 16  ;;  %v1466_v37 = vshll.u32 %v1440_v20, 16  ;;  %v1723_v56 = vld [vmem:[%s2992_s8 + $0x10] sm:$0x8] }
  0x31   : > { %v254_v38 = vshrl.u32 %v3035_v34, 16  ;;  %v1478_v40 = vor.u32 %v1477_v28, %v1474_v25  ;;  %v1766_v43 = vrot.slane %v3092_v26, 7  ;;  %v260_v44 = vshll.u32 %v211_v32, 16  ;;  %v490_v3 = vld [vmem:[%s2992_s8 + $0xc] sm:$0xf] }
  0x32   : > { %v861_v39 = vsel %vm3072_vm11, %v852_v27, %v860_v61  ;;  %v1465_v41 = vrot.slane %v1463_v35, 6  ;;  %v1468_v42 = vrot.slane %v1466_v37, 7  ;;  %v1318_v34 = vsel %vm3005_vm7, %v1316_v22, %v1317_v24  ;;  %v825_v10 = vld [vmem:[%s2992_s8 + $0x14] sm:$0xf]  ;;  %v3146_v13 = vld [vmem:[%s2992_s8 + $0x10] sm:$0xf] }
  0x33   : > { %1034 = vrot.lane.b32.xlu1 %v871_v21, %s2892_s25  ;;  %v1480_v45 = vrot.slane %v1478_v40, 4  ;;  %v3106_v47 = vor.u32 %v1487_v31, %v1484_v29  ;;  %v264_v50 = vshrl.u32 %v211_v32, 16  ;;  %v1315_v51 = vsel %vm3005_vm7, %v2575_v33, %v1314_v63  ;;  %v659_v17 = vld [vmem:[%s2992_s8 + $0x14] sm:$0xf]  ;;  %v3162_v33 = vld [vmem:[%s2992_s8 + $0x18] sm:$0xf] }
  0x34   : > { %1032 = vrot.lane.b32.xlu0 %v861_v39, %s2892_s25  ;;  %v1469_v53 = vor.u32 %v1468_v42, %v1465_v41  ;;  %v262_v55 = vrot.slane %v260_v44, 5  ;;  %v256_v58 = vrot.slane %v254_v38, 4  ;;  %v1768_v60 = vrot.slane %v1766_v43, 4  ;;  %v1443_v15 = vld [vmem:[%s2992_s8 + $0x1c] sm:$0xf] }
  0x35   : > { %v266_v57 = vrot.slane %v264_v50, 4  ;;  %v1769_v61 = vrot.slane %v3109_v49, 7  ;;  %v1489_v62 = vsel %vm3115_vm15, %v1480_v45, %v3106_v47  ;;  %v270_v2 = vshll.u32 %v3120_v54, 16  ;;  %v1108_v50 = vld [vmem:[%s2992_s8 + $0x14] sm:$0xf] }
  0x36   : > { %v1470_v59 = vrot.slane %v1469_v53, 4  ;;  %v2576_v8 = vrot.slane %v1723_v56, 11  ;;  %v257_v9 = vor.u32 %v256_v58, %v3054_v48  ;;  %v536_v14 = vrot.slane %v490_v3, 5  ;;  %v826_v48 = vld [vmem:[%s2992_s8 + $0x18] sm:$0xf] }
  0x37   : > { %1369 = vrot.lane.b32.xlu1 %v1318_v34, %s2893_s26  ;;  %v267_v1 = vor.u32 %v266_v57, %v262_v55  ;;  %v1770_v12 = vsel %vm3130_vm1, %v1768_v60, %v1769_v61  ;;  %v3150_v20 = vrot.slane %v270_v2, 5  ;;  %v874_v21 = vshrl.u32 %v825_v10, 16  ;;  %v1277_v60 = vld [vmem:[%s2992_s8 + $0x1c] sm:$0xf]  ;;  %v3268_v49 = vld [vmem:[%s2992_s8 + $0x18] sm:$0xf] }
  0x38   : > { %1367 = vrot.lane.b32.xlu0 %v1315_v51, %s2893_s26  ;;  %v1479_v6 = vsel %vm3115_vm15, %v1470_v59, %v1478_v40  ;;  %v877_v22 = vshll.u32 %v825_v10, 16  ;;  %v1767_v25 = vsel %vm3130_vm1, %v2576_v8, %v1766_v43  ;;  %v258_v26 = vrot.slane %v257_v9, 4  ;;  %v3190_v59 = vld [vmem:[%s2992_s8 + $0x18] sm:$0xf] }
  0x39   : > { %v268_v18 = vrot.slane %v267_v1, 4  ;;  %v538_v27 = vrot.slane %v536_v14, 4  ;;  %v539_v28 = vrot.slane %v3146_v13, 5  ;;  %v702_v29 = vrot.slane %v659_v17, 5  ;;  %v1444_v1 = vld [vmem:[%s2992_s8 + $0x20] sm:$0xf] }
  0x3a   : > { %v884_v31 = vshrl.u32 %v826_v48, 16  ;;  %v876_v35 = vrot.slane %v874_v21, 5  ;;  %v879_v37 = vrot.slane %v877_v22, 6  ;;  %v887_v38 = vshll.u32 %v826_v48, 16 }
  0x3b   : > { %1652 = vrot.lane.b32.xlu1 %v1489_v62, %s2894_s28  ;;  %v273_v32 = vsel %vm3050_vm10, %v268_v18, %v3150_v20  ;;  %v263_v39 = vsel %vm3050_vm10, %v258_v26, %v262_v55  ;;  %v535_v40 = vrot.slane %v533_v19, 4  ;;  %v704_v41 = vrot.slane %v702_v29, 4 }
  0x3c   : > { %1650 = vrot.lane.b32.xlu0 %v1479_v6, %s2894_s28  ;;  %v705_v42 = vrot.slane %v3162_v33, 5  ;;  %v540_v43 = vsel %vm2994_vm2, %v538_v27, %v539_v28  ;;  %v880_v44 = vor.u32 %v879_v37, %v876_v35  ;;  %v886_v34 = vrot.slane %v884_v31, 5  ;;  %v3200_v6 = vld [vmem:[%s2992_s8 + $0x20] sm:$0xf]  ;;  %v1726_v37 = vld [vmem:[%s2992_s8 + $0x1c] sm:$0xf] }
  0x3d   : > { %v889_v45 = vrot.slane %v887_v38, 6  ;;  %v537_v19 = vsel %vm2994_vm2, %v535_v40, %v536_v14  ;;  %v701_v51 = vrot.slane %v699_v23, 4  ;;  %v1154_v53 = vrot.slane %v1108_v50, 6  ;;  %v171_v40 = vld [vmem:[%s2992_s8] sm:$0xf] }
  0x3e   : > { %v1492_v55 = vshrl.u32 %v1443_v15, 16  ;;  %v706_v56 = vsel %vm2994_vm2, %v704_v41, %v705_v42  ;;  %v882_v57 = vrot.slane %v880_v44, 4  ;;  %v1495_v16 = vshll.u32 %v1443_v15, 16  ;;  %190 = vst.msk [vmem:[#allocation2] sm:$0xf] %vm4444_vm4, %v171_v40 }
  0x3f   : > { %1821 = vrot.lane.b32.xlu1 %v1770_v12, %s2895_s29  ;;  %v3187_v58 = vor.u32 %v889_v45, %v886_v34  ;;  %v703_v23 = vsel %vm2994_vm2, %v701_v51, %v702_v29  ;;  %v872_v62 = vrot.slane %v3076_v5, 4  ;;  %v1156_v2 = vrot.slane %v1154_v53, 4  ;;  %v213_v5 = vld [vmem:[%s2992_s8 + $0x14] sm:$0xf]  ;;  %v3241_v45 = vld [vmem:[%s2992_s8 + $0x20] sm:$0xf] }
  0x40   : > { %1819 = vrot.lane.b32.xlu0 %v1767_v25, %s2895_s29  ;;  %v1157_v3 = vrot.slane %v3190_v59, 6  ;;  %v1320_v8 = vrot.slane %v1277_v60, 6  ;;  %v1494_v9 = vrot.slane %v1492_v55, 6  ;;  %v1497_v12 = vrot.slane %v1495_v16, 7  ;;  %v172_v15 = vld [vmem:[%s2992_s8 + $0x4] sm:$0xf] }
  0x41   : > { %v891_v10 = vsel %vm3072_vm11, %v882_v57, %v3187_v58  ;;  %v1502_v14 = vshrl.u32 %v1444_v1, 16  ;;  %v1505_v17 = vshll.u32 %v1444_v1, 16  ;;  %v881_v18 = vsel %vm3072_vm11, %v872_v62, %v880_v44  ;;  %191 = vst.msk [vmem:[#allocation2 + $0x4] sm:$0xf] %vm4444_vm4, %v172_v15  ;;  %v1110_v40 = vld [vmem:[%s2992_s8 + $0x1c] sm:$0xf] }
  0x42   : > { %v1153_v48 = vrot.slane %v1151_v36, 4  ;;  %v1322_v21 = vrot.slane %v1320_v8, 4  ;;  %v1323_v22 = vrot.slane %v3200_v6, 6  ;;  %v280_v25 = vshll.u32 %v213_v5, 16  ;;  %v1446_v15 = vld [vmem:[%s2992_s8 + $0x28] sm:$0xf] }
  0x43   : > { %420 = vrot.lane.b32.xlu1 %v273_v32, %s2891_s24  ;;  %v284_v26 = vshrl.u32 %v213_v5, 16  ;;  %v1158_v27 = vsel %vm3005_vm7, %v1156_v2, %v1157_v3  ;;  %v1498_v29 = vor.u32 %v1497_v12, %v1494_v9  ;;  %v1504_v31 = vrot.slane %v1502_v14, 6  ;;  %v828_v14 = vld [vmem:[%s2992_s8 + $0x20] sm:$0xf]  ;;  %v3346_v6 = vld [vmem:[%s2992_s8 + $0x24] sm:$0xf] }
  0x44   : > { %418 = vrot.lane.b32.xlu0 %v263_v39, %s2891_s24  ;;  %v1507_v30 = vrot.slane %v1505_v17, 7  ;;  %v274_v36 = vshrl.u32 %v3120_v54, 16  ;;  %v1155_v32 = vsel %vm3005_vm7, %v1153_v48, %v1154_v53  ;;  %v1319_v35 = vrot.slane %v1317_v24, 4  ;;  %v3234_v24 = vld [vmem:[%s2992_s8 + $0x18] sm:$0xf] }
  0x45   : > { %v282_v38 = vrot.slane %v280_v25, 5  ;;  %v286_v39 = vrot.slane %v284_v26, 4  ;;  %v1324_v54 = vsel %vm3005_vm7, %v1322_v21, %v1323_v22  ;;  %v1500_v41 = vrot.slane %v1498_v29, 4  ;;  %v3281_v21 = vld [vmem:[%s2992_s8 + $0x20] sm:$0xf] }
  0x46   : > { %v1772_v7 = vrot.slane %v1726_v37, 7  ;;  %v1321_v44 = vsel %vm3005_vm7, %v1319_v35, %v1320_v8  ;;  %v1490_v34 = vrot.slane %v3106_v47, 4  ;;  %v276_v50 = vrot.slane %v274_v36, 4  ;;  %v174_v36 = vld [vmem:[%s2992_s8 + $0xc] sm:$0xf] }
  0x47   : > { %589 = vrot.lane.b32.xlu1 %v540_v43, %s2889_s18  ;;  %v3231_v43 = vor.u32 %v1507_v30, %v1504_v31  ;;  %v290_v51 = vshll.u32 %v3234_v24, 16  ;;  %v1775_v55 = vrot.slane %v3241_v45, 7  ;;  %v1771_v60 = vrot.slane %v1769_v61, 4  ;;  %v661_v61 = vld [vmem:[%s2992_s8 + $0x1c] sm:$0xf]  ;;  %v2783_v45 = vld [vmem:[%s4435_s1 + $0x8] sm:$0xff]  }
  0x48   : > { %587 = vrot.lane.b32.xlu0 %v537_v19, %s2889_s18  ;;  %v287_v19 = vor.u32 %v286_v39, %v282_v38  ;;  %v1774_v53 = vrot.slane %v1772_v7, 4  ;;  %v1499_v57 = vsel %vm3115_vm15, %v1490_v34, %v1498_v29  ;;  %v277_v16 = vor.u32 %v276_v50, %v3150_v20  ;;  %193 = vst.msk [vmem:[#allocation2 + $0xc] sm:$0xf] %vm4444_vm4, %v174_v36  ;;  %v1279_v50 = vld [vmem:[%s2992_s8 + $0x24] sm:$0xf] }
  0x49   : > { %v1509_v47 = vsel %vm3115_vm15, %v1500_v41, %v3231_v43  ;;  %v3260_v1 = vrot.slane %v290_v51, 5  ;;  %v708_v48 = vrot.slane %v661_v61, 5  ;;  %v907_v29 = vshll.u32 %v828_v14, 16 }
  0x4a   : > { %v288_v62 = vrot.slane %v287_v19, 4  ;;  %v1776_v8 = vsel %vm3130_vm1, %v1774_v53, %v1775_v55  ;;  %v278_v12 = vrot.slane %v277_v16, 4  ;;  %v541_v30 = vrot.slane %v539_v28, 4 }
  0x4b   : > { %755 = vrot.lane.b32.xlu1 %v706_v56, %s2888_s17  ;;  %v492_v56 = vld [vmem:[%s2992_s8 + $0x14] sm:$0xf]  ;;  %v710_v35 = vrot.slane %v708_v48, 4  ;;  %v711_v37 = vrot.slane %v3281_v21, 5  ;;  %v909_v39 = vrot.slane %v907_v29, 6  ;;  %v707_v41 = vrot.slane %v705_v42, 4 }
  0x4c   : > { %753 = vrot.lane.b32.xlu0 %v703_v23, %s2888_s17  ;;  %v827_v23 = vld [vmem:[%s2992_s8 + $0x1c] sm:$0xf]  ;;  %v542_v2 = vrot.slane %v492_v56, 5  ;;  %v293_v17 = vsel %vm3050_vm10, %v288_v62, %v3260_v1  ;;  %v283_v31 = vsel %vm3050_vm10, %v278_v12, %v282_v38  ;;  %v1160_v34 = vrot.slane %v1110_v40, 6 }
  0x4d   : > { %v894_v9 = vshrl.u32 %v827_v23, 16  ;;  %v897_v20 = vshll.u32 %v827_v23, 16  ;;  %v709_v53 = vsel %vm2994_vm2, %v707_v41, %v708_v48  ;;  %v892_v56 = vrot.slane %v3187_v58, 4  ;;  %v3323_v23 = vld [vmem:[%s2992_s8 + $0x28] sm:$0xf] }
  0x4e   : > { %v544_v5 = vrot.slane %v542_v2, 4  ;;  %v1525_v62 = vshll.u32 %v1446_v15, 16  ;;  %v294_v29 = vshrl.u32 %v3234_v24, 16 }
  0x4f   : > { %1038 = vrot.lane.b32.xlu1 %v891_v10, %s2892_s25  ;;  %v1773_v10 = vsel %vm3130_vm1, %v1771_v60, %v1772_v7  ;;  %v896_v25 = vrot.slane %v894_v9, 5  ;;  %v899_v26 = vrot.slane %v897_v20, 6  ;;  %v1445_v7 = vld [vmem:[%s2992_s8 + $0x24] sm:$0xf]  ;;  %v1522_v60 = vshrl.u32 %v1446_v15, 16 }
  0x50   : > { %1036 = vrot.lane.b32.xlu0 %v881_v18, %s2892_s25  ;;  %v545_v18 = vrot.slane %v3268_v49, 5  ;;  %v1512_v33 = vshrl.u32 %v1445_v7, 16  ;;  %v1515_v42 = vshll.u32 %v1445_v7, 16  ;;  %v215_v9 = vld [vmem:[%s2992_s8 + $0x1c] sm:$0xf]  ;;  %v1527_v48 = vrot.slane %v1525_v62, 7 }
  0x51   : > { %v900_v28 = vor.u32 %v899_v26, %v896_v25  ;;  %v300_v25 = vshll.u32 %v215_v9, 16  ;;  %v176_v26 = vld [vmem:[%s2992_s8 + $0x14] sm:$0xf] }
  0x52   : > { %v546_v13 = vsel %vm2994_vm2, %v544_v5, %v545_v18  ;;  %v1514_v61 = vrot.slane %v1512_v33, 6  ;;  %v1517_v58 = vrot.slane %v1515_v42, 7  ;;  %v1524_v5 = vrot.slane %v1522_v60, 6  ;;  %195 = vst.msk [vmem:[#allocation2 + $0x14] sm:$0xf] %vm4444_vm4, %v176_v26 }
  0x53   : > { %1207 = vrot.lane.b32.xlu1 %v1158_v27, %s2890_s21  ;;  %v904_v27 = vshrl.u32 %v828_v14, 16  ;;  %v902_v19 = vrot.slane %v900_v28, 4  ;;  %v901_v20 = vsel %vm3072_vm11, %v892_v56, %v900_v28  ;;  %v1329_v14 = vrot.slane %v3323_v23, 6  ;;  %v3368_v28 = vld [vmem:[%s2992_s8 + $0x28] sm:$0xf] }
  0x54   : > { %1205 = vrot.lane.b32.xlu0 %v1155_v32, %s2890_s21  ;;  %v173_v32 = vld [vmem:[%s2992_s8 + $0x8] sm:$0xf]  ;;  %v3365_v24 = vor.u32 %v1527_v48, %v1524_v5  ;;  %v1777_v56 = vrot.slane %v1775_v55, 4  ;;  %v2896_v60 = vmov 0.0   ;;  %v177_v26 = vld [vmem:[%s2992_s8 + $0x18] sm:$0xf] }
  0x55   : > { %192 = vst.msk [vmem:[#allocation2 + $0x8] sm:$0xf] %vm4444_vm4, %v173_v32  ;;  %v906_v38 = vrot.slane %v904_v27, 5  ;;  %v175_v27 = vld [vmem:[%s2992_s8 + $0x10] sm:$0xf]  ;;  %2615 = vmatprep.subr.bf16.mxu0 %v2896_v60  ;;  %2657 = vmatprep.subr.bf16.mxu1 %v2896_v60 }
  0x56   : > { %194 = vst.msk [vmem:[#allocation2 + $0x10] sm:$0xf] %vm4444_vm4, %v175_v27  ;;  %v218_v32 = vld [vmem:[%s2992_s8 + $0x28] sm:$0xf]  ;;  %196 = vst.msk [vmem:[#allocation2 + $0x18] sm:$0xf] %vm4444_vm4, %v177_v26 }
  0x57   : > { %1373 = vrot.lane.b32.xlu1 %v1324_v54, %s2893_s26  ;;  %v543_v54 = vsel %vm2994_vm2, %v541_v30, %v542_v2  ;;  %v3312_v51 = vor.u32 %v909_v39, %v906_v38  ;;  %v219_v30 = vld [vmem:[%s2992_s8 + $0x2c] sm:$0xf]  ;;  %v1778_v38 = vrot.slane %v3346_v6, 7  ;;  %v3371_v39 = vrot.slane %v300_v25, 5  ;;  %v2784_v25 = vld [vmem:[%s4435_s1] sm:$0xff]  }
  0x58   : > { %1371 = vrot.lane.b32.xlu0 %v1321_v44, %s2893_s26  ;;  %v712_v44 = vsel %vm2994_vm2, %v710_v35, %v711_v37  ;;  %v2782_v35 = vld [vmem:[%s4435_s1 + $0x10] ss:$0 sps:$4 sm:$0x33]   ;;  %v340_v7 = vshll.u32 %v219_v30, 16  ;;  %v330_v15 = vshll.u32 %v218_v32, 16 }
  0x59   : > { %v911_v2 = vsel %vm3072_vm11, %v902_v19, %v3312_v51  ;;  %v334_v19 = vshrl.u32 %v218_v32, 16  ;;  %v2005_v33 = vsel %vm1143_vm3, %v2782_v35, 0  ;;  %v1780_v42 = vrot.slane %v1778_v38, 4  ;;  %v494_v6 = vld [vmem:[%s2992_s8 + $0x1c] sm:$0xf] }
  0x5a   : > { %2616 = vmatpush3.bf16.msra.mxu0 %v2005_v33  ;;  %2660 = vmatpush3.bf16.msra.mxu1 %v2005_v33  ;;  %v1779_v27 = vsel %vm3130_vm1, %v1777_v56, %v1778_v38  ;;  %vm2897_vm3 = vmmov 0   ;;  %v548_v35 = vrot.slane %v494_v6, 5  ;;  %v547_v33 = vrot.slane %v545_v18, 4  ;;  %v829_v56 = vld [vmem:[%s2992_s8 + $0x24] sm:$0xf] }
  0x5b   : > { %1656 = vrot.lane.b32.xlu1 %v1509_v47, %s2894_s28  ;;  %v3315_v47 = vld [vmem:[%s2992_s8 + $0x20] sm:$0xf]  ;;  %2617 = vmatprep.subr.bf16.mxu0 %v2896_v60  ;;  %v830_v18 = vld [vmem:[%s2992_s8 + $0x28] sm:$0xf] }
  0x5c   : > { %1654 = vrot.lane.b32.xlu0 %v1499_v57, %s2894_s28  ;;  %v1326_v57 = vrot.slane %v1279_v50, 6  ;;  %v1163_v16 = vrot.slane %v3315_v47, 6  ;;  %v296_v50 = vrot.slane %v294_v29, 4  ;;  %2658 = vmatprep.subr.bf16.mxu1 %v2896_v60  ;;  %v181_v29 = vld [vmem:[%s2992_s8 + $0x28] sm:$0xf]  ;;  %v927_v6 = vshll.u32 %v830_v18, 16 }
  0x5d   : > { %2621 = vmatprep.mubr.msk.bf16.mxu0 %vm2897_vm3, %v2896_v60  ;;  %200 = vst.msk [vmem:[#allocation2 + $0x28] sm:$0xf] %vm4444_vm4, %v181_v29  ;;  %2641 = vmatprep.mubr.msk.bf16.mxu1 %vm2897_vm3, %v2896_v60 }
  0x5e   : > { %v1328_v12 = vrot.slane %v1326_v57, 4  ;;  %2618 = vmatpush3.bf16.msra.mxu0 %v2783_v45  ;;  %2661 = vmatpush3.bf16.msra.mxu1 %v2783_v45  ;;  %v667_v45 = vld [vmem:[%s2992_s8 + $0x34] sm:$0xf] }
  0x5f   : > { %1825 = vrot.lane.b32.xlu1 %v1776_v8, %s2895_s29  ;;  %v1162_v8 = vrot.slane %v1160_v34, 4  ;;  %2619 = vmatprep.subr.bf16.mxu0 %v2896_v60 }
  0x60   : > { %1823 = vrot.lane.b32.xlu0 %v1773_v10, %s2895_s29  ;;  %v1159_v10 = vrot.slane %v1157_v3, 4  ;;  %v1518_v3 = vor.u32 %v1517_v58, %v1514_v61  ;;  %v297_v61 = vor.u32 %v296_v50, %v3260_v1  ;;  %v3399_v58 = vld [vmem:[%s2992_s8 + $0x30] sm:$0xf]  ;;  %v178_v1 = vld [vmem:[%s2992_s8 + $0x1c] sm:$0xf]  ;;  %2659 = vmatprep.subr.bf16.mxu1 %v2896_v60 }
  0x61   : > { %v1164_v59 = vsel %vm3005_vm7, %v1162_v8, %v1163_v16  ;;  %v350_v48 = vshll.u32 %v3399_v58, 16  ;;  %197 = vst.msk [vmem:[#allocation2 + $0x1c] sm:$0xf] %vm4444_vm4, %v178_v1 }
  0x62   : > { %v1520_v40 = vrot.slane %v1518_v3, 4  ;;  %2620 = vmatpush3.bf16.msra.mxu0 %v2784_v25  ;;  %2662 = vmatpush3.bf16.msra.mxu1 %v2784_v25  ;;  %v832_v25 = vld [vmem:[%s2992_s8 + $0x30] sm:$0xf] }
  0x63   : > { %424 = vrot.lane.b32.xlu1 %v293_v17, %s2891_s24  ;;  %v1325_v17 = vrot.slane %v1323_v22, 4  ;;  %v304_v22 = vshrl.u32 %v215_v9, 16  ;;  %v3401_v9 = vrot.slane %v330_v15, 5  ;;  %v3441_v32 = vrot.slane %v350_v48, 5  ;;  %v663_v15 = vld [vmem:[%s2992_s8 + $0x24] sm:$0xf] }
  0x64   : > { %422 = vrot.lane.b32.xlu0 %v283_v31, %s2891_s24  ;;  %v1161_v31 = vsel %vm3005_vm7, %v1159_v10, %v1160_v34  ;;  %v1510_v34 = vrot.slane %v3231_v43, 4  ;;  %v1529_v43 = vsel %vm3115_vm15, %v1520_v40, %v3365_v24  ;;  %v3447_v40 = vld [vmem:[%s2992_s8 + $0x20] sm:$0xf]  ;;  %v3494_v48 = vld [vmem:[%s2992_s8 + $0x30] sm:$0xf] }
  0x65   : > { %v1327_v36 = vsel %vm3005_vm7, %v1325_v17, %v1326_v57  ;;  %v306_v41 = vrot.slane %v304_v22, 4  ;;  %v182_v22 = vld [vmem:[%s2992_s8 + $0x2c] sm:$0xf]  ;;  %v551_v50 = vrot.slane %v3447_v40, 5 }
  0x66   : > { %v1519_v55 = vsel %vm3115_vm15, %v1510_v34, %v1518_v3  ;;  %201 = vst.msk [vmem:[#allocation2 + $0x2c] sm:$0xf] %vm4444_vm4, %v182_v22  ;;  %v550_v34 = vrot.slane %v548_v35, 4 }
  0x67   : > { %593 = vrot.lane.b32.xlu1 %v546_v13, %s2889_s18  ;;  %v1330_v13 = vsel %vm3005_vm7, %v1328_v12, %v1329_v14  ;;  %v307_v62 = vor.u32 %v306_v41, %v3371_v39 }
  0x68   : > { %591 = vrot.lane.b32.xlu0 %v543_v54, %s2889_s18  ;;  %v3375_v54 = vld [vmem:[%s2992_s8 + $0x20] sm:$0xf]  ;;  %v552_v49 = vsel %vm2994_vm2, %v550_v34, %v551_v50 }
  0x69   : > { %v310_v57 = vshll.u32 %v3375_v54, 16  ;;  %v308_v12 = vrot.slane %v307_v62, 4  ;;  %v3474_v62 = vld [vmem:[%s2992_s8 + $0x28] sm:$0xf] }
  0x6b   : > { %759 = vrot.lane.b32.xlu1 %v712_v44, %s2888_s17  ;;  %v344_v44 = vshrl.u32 %v219_v30, 16  ;;  %v3413_v17 = vrot.slane %v310_v57, 5 }
  0x6c   : > { %757 = vrot.lane.b32.xlu0 %v709_v53, %s2888_s17  ;;  %v1781_v53 = vrot.slane %v3368_v28, 7  ;;  %v180_v28 = vld [vmem:[%s2992_s8 + $0x24] sm:$0xf] }
  0x6d   : > { %v346_v8 = vrot.slane %v344_v44, 4  ;;  %v313_v30 = vsel %vm3050_vm10, %v308_v12, %v3413_v17  ;;  %v3456_v44 = vld [vmem:[%s2992_s8 + $0x30] sm:$0xf]  ;;  %v717_v12 = vrot.slane %v3474_v62, 5  ;;  %199 = vst.msk [vmem:[#allocation2 + $0x24] sm:$0xf] %vm4444_vm4, %v180_v28 }
  0x6e   : > { %v1782_v10 = vsel %vm3130_vm1, %v1780_v42, %v1781_v53 }
  0x6f   : > { %1042 = vrot.lane.b32.xlu1 %v911_v2, %s2892_s25  ;;  %v3390_v2 = vrot.slane %v340_v7, 5  ;;  %v3452_v7 = vld [vmem:[%s2992_s8 + $0x28] sm:$0xf] }
  0x70   : > { %1040 = vrot.lane.b32.xlu0 %v901_v20, %s2892_s25  ;;  %v336_v20 = vrot.slane %v334_v19, 4  ;;  %v557_v42 = vrot.slane %v3452_v7, 5 }
  0x71   : > { %v347_v5 = vor.u32 %v346_v8, %v3390_v2  ;;  %v714_v8 = vrot.slane %v663_v15, 5 }
  0x72   : > { %v337_v3 = vor.u32 %v336_v20, %v3401_v9  ;;  %v559_v20 = vrot.slane %v557_v42, 4 }
  0x73   : > { %1211 = vrot.lane.b32.xlu1 %v1164_v59, %s2890_s21  ;;  %v298_v59 = vrot.slane %v297_v61, 4  ;;  %v549_v61 = vsel %vm2994_vm2, %v547_v33, %v548_v35  ;;  %v716_v26 = vrot.slane %v714_v8, 4 }
  0x74   : > { %1209 = vrot.lane.b32.xlu0 %v1161_v31, %s2890_s21  ;;  %v498_v31 = vld [vmem:[%s2992_s8 + $0x2c] sm:$0xf]  ;;  %v338_v38 = vrot.slane %v337_v3, 4  ;;  %v924_v3 = vshrl.u32 %v830_v18, 16 }
  0x75   : > { %v560_v41 = vrot.slane %v498_v31, 5  ;;  %v834_v31 = vld [vmem:[%s2992_s8 + $0x38] sm:$0xf]  ;;  %v718_v34 = vsel %vm2994_vm2, %v716_v26, %v717_v12 }
  0x76   : > { %v343_v19 = vsel %vm3050_vm10, %v338_v38, %v3390_v2  ;;  %v914_v2 = vshrl.u32 %v829_v56, 16  ;;  %v944_v38 = vshrl.u32 %v832_v25, 16  ;;  %v926_v15 = vrot.slane %v924_v3, 5 }
  0x77   : > { %1377 = vrot.lane.b32.xlu1 %v1330_v13, %s2893_s26  ;;  %v303_v13 = vsel %vm3050_vm10, %v298_v59, %v3371_v39  ;;  %v562_v57 = vrot.slane %v560_v41, 4  ;;  %v3501_v59 = vld [vmem:[%s2992_s8 + $0x38] sm:$0xf]  ;;  %v561_v35 = vsel %vm2994_vm2, %v559_v20, %v560_v41  ;;  %v964_v33 = vshrl.u32 %v834_v31, 16 }
  0x78   : > { %1375 = vrot.lane.b32.xlu0 %v1327_v36, %s2893_s26  ;;  %v348_v36 = vrot.slane %v347_v5, 4  ;;  %v726_v5 = vrot.slane %v667_v45, 5  ;;  %v916_v22 = vrot.slane %v914_v2, 5  ;;  %v967_v45 = vshll.u32 %v834_v31, 16  ;;  %v3535_v31 = vld [vmem:[%s2992_s8 + $0x34] sm:$0xf] }
  0x79   : > { %v946_v2 = vrot.slane %v944_v38, 5 }
  0x7a   : > { %v353_v39 = vsel %vm3050_vm10, %v348_v36, %v3441_v32  ;;  %v728_v21 = vrot.slane %v726_v5, 4  ;;  %v969_v26 = vrot.slane %v967_v45, 6  ;;  %v3565_v45 = vld [vmem:[%s2992_s8 + $0x2c] sm:$0xf] }
  0x7b   : > { %1660 = vrot.lane.b32.xlu1 %v1529_v43, %s2894_s28  ;;  %v563_v43 = vrot.slane %v3456_v44, 5  ;;  %v1332_v47 = vrot.slane %v3565_v45, 6  ;;  %v3798_v44 = vld [vmem:[%s2992_s8 + $0x40] sm:$0xf] }
  0x7c   : > { %1658 = vrot.lane.b32.xlu0 %v1519_v55, %s2894_s28  ;;  %v917_v55 = vshll.u32 %v829_v56, 16 }
  0x7d   : > { %v564_v1 = vsel %vm2994_vm2, %v562_v57, %v563_v43 }
  0x7e   : > { %v919_v29 = vrot.slane %v917_v55, 6 }
  0x7f   : > { %1829 = vrot.lane.b32.xlu1 %v1782_v10, %s2895_s29  ;;  %v833_v10 = vld [vmem:[%s2992_s8 + $0x34] sm:$0xf] }
  0x80   : > { %1827 = vrot.lane.b32.xlu0 %v1779_v27, %s2895_s29  ;;  %v713_v27 = vrot.slane %v711_v37, 4  ;;  %v957_v36 = vshll.u32 %v833_v10, 16  ;;  %v4440_v37 = vrot.slane %v3501_v59, 5  ;;  %v920_v41 = vor.u32 %v919_v29, %v916_v22  ;;  %v1112_v29 = vld [vmem:[%s2992_s8 + $0x24] sm:$0xf] }
  0x82   : > { %v959_v57 = vrot.slane %v957_v36, 6 }
  0x83   : > { %428 = vrot.lane.b32.xlu1 %v313_v30, %s2891_s24  ;;  %v954_v30 = vshrl.u32 %v833_v10, 16 }
  0x84   : > { %426 = vrot.lane.b32.xlu0 %v303_v13, %s2891_s24  ;;  %v4441_v13 = vrot.slane %v3494_v48, 5 }
  0x85   : > { %v956_v56 = vrot.slane %v954_v30, 5 }
  0x86   : > { %v725_v18 = vrot.slane %v4441_v13, 4 }
  0x87   : > { %436 = vrot.lane.b32.xlu1 %v353_v39, %s2891_s24  ;;  %v947_v39 = vshll.u32 %v832_v25, 16  ;;  %v966_v25 = vrot.slane %v964_v33, 5  ;;  %v3557_v33 = vld [vmem:[%s2992_s8 + $0x38] sm:$0xf] }
  0x88   : > { %434 = vrot.lane.b32.xlu0 %v343_v19, %s2891_s24  ;;  %v929_v19 = vrot.slane %v927_v6, 6  ;;  %v727_v3 = vsel %vm2994_vm2, %v725_v18, %v726_v5  ;;  %v912_v6 = vrot.slane %v3312_v51, 4 }
  0x89   : > { %v949_v55 = vrot.slane %v947_v39, 6  ;;  %v3543_v51 = vor.u32 %v969_v26, %v966_v25  ;;  %v4438_v26 = vrot.slane %v3557_v33, 6 }
  0x8a   : > { %v3524_v20 = vor.u32 %v929_v19, %v926_v15  ;;  %v921_v39 = vsel %vm3072_vm11, %v912_v6, %v920_v41  ;;  %v1178_v15 = vrot.slane %v3535_v31, 6  ;;  %v3553_v19 = vld [vmem:[%s2992_s8 + $0x30] sm:$0xf]  ;;  %v1451_v31 = vld [vmem:[%s2992_s8 + $0x3c] sm:$0xf] }
  0x8b   : > { %597 = vrot.lane.b32.xlu1 %v552_v49, %s2889_s18  ;;  %v715_v49 = vsel %vm2994_vm2, %v713_v27, %v714_v8  ;;  %v922_v8 = vrot.slane %v920_v41, 4  ;;  %v3530_v22 = vor.u32 %v949_v55, %v946_v2  ;;  %v1165_v2 = vrot.slane %v1163_v16, 4  ;;  %v3581_v16 = vld [vmem:[%s2992_s8 + $0x3c] sm:$0xf] }
  0x8c   : > { %595 = vrot.lane.b32.xlu0 %v549_v61, %s2889_s18  ;;  %v730_v61 = vsel %vm2994_vm2, %v728_v21, %v4440_v37  ;;  %v4437_v55 = vrot.slane %v3553_v19, 6  ;;  %v1180_v25 = vrot.slane %v1178_v15, 4  ;;  %v1452_v37 = vld [vmem:[%s2992_s8 + $0x40] sm:$0xf] }
  0x8d   : > { %v931_v36 = vsel %vm3072_vm11, %v922_v8, %v3524_v20  ;;  %v952_v21 = vrot.slane %v3530_v22, 4 }
  0x8f   : > { %605 = vrot.lane.b32.xlu1 %v564_v1, %s2889_s18  ;;  %v960_v1 = vor.u32 %v959_v57, %v956_v56 }
  0x90   : > { %603 = vrot.lane.b32.xlu0 %v561_v35, %s2889_s18  ;;  %v1166_v35 = vrot.slane %v1112_v29, 6 }
  0x91   : > { %v962_v5 = vrot.slane %v960_v1, 4  ;;  %v961_v18 = vsel %vm3072_vm11, %v952_v21, %v960_v1  ;;  %v1448_v21 = vld [vmem:[%s2992_s8 + $0x30] sm:$0xf] }
  0x92   : > { %v1168_v56 = vrot.slane %v1166_v35, 4 }
  0x93   : > { %763 = vrot.lane.b32.xlu1 %v718_v34, %s2888_s17  ;;  %v3549_v34 = vld [vmem:[%s2992_s8 + $0x28] sm:$0xf]  ;;  %v971_v41 = vsel %vm3072_vm11, %v962_v5, %v3543_v51  ;;  %v1167_v5 = vsel %vm3005_vm7, %v1165_v2, %v1166_v35  ;;  %v1344_v35 = vrot.slane %v3581_v16, 6  ;;  %v1331_v2 = vrot.slane %v1329_v14, 4 }
  0x94   : > { %761 = vrot.lane.b32.xlu0 %v715_v49, %s2888_s17  ;;  %v750_v10 = vpop.permute.xlu0 %749  ;;  %v4439_v57 = vrot.slane %v3549_v34, 6  ;;  %v1542_v16 = vshrl.u32 %v1448_v21, 16 }
  0x95   : > { %v584_v27 = vpop.permute.xlu1 %583 }
  0x96   : > { %v1170_v1 = vsel %vm3005_vm7, %v1168_v56, %v4439_v57  ;;  %v1182_v56 = vsel %vm3005_vm7, %v1180_v25, %v4438_v26  ;;  %v1545_v57 = vshll.u32 %v1448_v21, 16 }
  0x97   : > { %771 = vrot.lane.b32.xlu1 %v730_v61, %s2888_s17  ;;  %v1447_v61 = vld [vmem:[%s2992_s8 + $0x2c] sm:$0xf] }
  0x98   : > { %769 = vrot.lane.b32.xlu0 %v727_v3, %s2888_s17  ;;  %v3538_v30 = vpop.permute.xlu0 %1201  ;;  %v3577_v3 = vld [vmem:[%s2992_s8 + $0x30] sm:$0xf]  ;;  %v1532_v6 = vshrl.u32 %v1447_v61, 16  ;;  %v1535_v29 = vshll.u32 %v1447_v61, 16  ;;  %v3611_v61 = vld [vmem:[%s2992_s8 + $0x40] sm:$0xf] }
  0x99   : > { %v586_v38 = vpop.permute.xlu1 %585  ;;  %v1335_v45 = vrot.slane %v3577_v3, 6 }
  0x9a   : > { %v1534_v25 = vrot.slane %v1532_v6, 6  ;;  %v1537_v26 = vrot.slane %v1535_v29, 7  ;;  %v1347_v6 = vrot.slane %v3611_v61, 6 }
  0x9b   : > { %1046 = vrot.lane.b32.xlu1 %v931_v36, %s2892_s25 }
  0x9c   : > { %1044 = vrot.lane.b32.xlu0 %v921_v39, %s2892_s25  ;;  %v3596_v39 = vld [vmem:[%s2992_s8 + $0x38] sm:$0xf]  ;;  %v1538_v21 = vor.u32 %v1537_v26, %v1534_v25  ;;  %v3647_v25 = vld [vmem:[%s2992_s8 + $0x2c] sm:$0xf] }
  0x9d   : > { %v752_v49 = vpop.permute.xlu1 %751  ;;  %v1341_v14 = vrot.slane %v3596_v39, 6 }
  0x9e   : > { %v415_v8 = vpop.permute.xlu0 %414 }
  0x9f   : > { %469 = vst.msk [vmem:[#allocation2] sm:$0xf] %vm468_vm5, %v415_v8  ;;  %1054 = vrot.lane.b32.xlu1 %v971_v41, %s2892_s25  ;;  %v1572_v8 = vshrl.u32 %v1451_v31, 16 }
  0xa0   : > { %638 = vst.msk [vmem:[#allocation2] sm:$0xf] %vm637_vm6, %v584_v27  ;;  %1052 = vrot.lane.b32.xlu0 %v961_v18, %s2892_s25  ;;  %v1177_v27 = vrot.slane %v4437_v55, 4  ;;  %v1450_v18 = vld [vmem:[%s2992_s8 + $0x38] sm:$0xf]  ;;  %v1575_v55 = vshll.u32 %v1451_v31, 16 }
  0xa1   : > { %v1204_v36 = vpop.permute.xlu1 %1203  ;;  %804 = vst.msk [vmem:[#allocation2] sm:$0xf] %vm803_vm8, %v750_v10  ;;  %v1334_v10 = vrot.slane %v1332_v47, 4  ;;  %v1565_v13 = vshll.u32 %v1450_v18, 16  ;;  %v1346_v31 = vrot.slane %v1344_v35, 4 }
  0xa2   : > { %v417_v41 = vpop.permute.xlu0 %416  ;;  %v1179_v23 = vsel %vm3005_vm7, %v1177_v27, %v1178_v15  ;;  %v1577_v29 = vrot.slane %v1575_v55, 7  ;;  %v1582_v15 = vshrl.u32 %v1452_v37, 16 }
  0xa3   : > { %470 = vst.msk [vmem:[#allocation2 + $0x4] sm:$0xf] %vm468_vm5, %v417_v41  ;;  %1215 = vrot.lane.b32.xlu1 %v1170_v1, %s2890_s21  ;;  %v1562_v1 = vshrl.u32 %v1450_v18, 16  ;;  %v1336_v27 = vsel %vm3005_vm7, %v1334_v10, %v1335_v45  ;;  %v1544_v18 = vrot.slane %v1542_v16, 6 }
  0xa4   : > { %639 = vst.msk [vmem:[#allocation2 + $0x4] sm:$0xf] %vm637_vm6, %v586_v38  ;;  %1213 = vrot.lane.b32.xlu0 %v1167_v5, %s2890_s21  ;;  %v1585_v5 = vshll.u32 %v1452_v37, 16  ;;  %v1343_v37 = vrot.slane %v1341_v14, 4  ;;  %v1584_v26 = vrot.slane %v1582_v15, 6 }
  0xa5   : > { %v1035_v41 = vpop.permute.xlu1 %1034  ;;  %805 = vst.msk [vmem:[#allocation2 + $0x4] sm:$0xf] %vm803_vm8, %v752_v49  ;;  %v1574_v49 = vrot.slane %v1572_v8, 6  ;;  %v1564_v55 = vrot.slane %v1562_v1, 6  ;;  %v1567_v8 = vrot.slane %v1565_v13, 7  ;;  %v1540_v13 = vrot.slane %v1538_v21, 4 }
  0xa6   : > { %1088 = vst.msk [vmem:[#allocation2 + $0x4] sm:$0xf] %vm1086_vm9, %v1035_v41  ;;  %v1033_v38 = vpop.permute.xlu0 %1032  ;;  %v1547_v41 = vrot.slane %v1545_v57, 7  ;;  %v1587_v10 = vrot.slane %v1585_v5, 7  ;;  %v1530_v1 = vrot.slane %v3365_v24, 4  ;;  %v1784_v24 = vrot.slane %v3647_v25, 7 }
  0xa7   : > { %1087 = vst.msk [vmem:[#allocation2] sm:$0xf] %vm1086_vm9, %v1033_v38  ;;  %1223 = vrot.lane.b32.xlu1 %v1182_v56, %s2890_s21  ;;  %v1578_v57 = vor.u32 %v1577_v29, %v1574_v49  ;;  %v3652_v38 = vor.u32 %v1567_v8, %v1564_v55  ;;  %v217_v49 = vld [vmem:[%s2992_s8 + $0x24] sm:$0xf]  ;;  %v3661_v5 = vld [vmem:[%s2992_s8 + $0x30] sm:$0xf] }
  0xa8   : > { %1257 = vst.msk [vmem:[#allocation2 + $0x4] sm:$0xf] %vm1255_vm13, %v1204_v36  ;;  %1221 = vrot.lane.b32.xlu0 %v1179_v23, %s2890_s21  ;;  %1256 = vst.msk [vmem:[#allocation2] sm:$0xf] %vm1255_vm13, %v3538_v30  ;;  %v1333_v36 = vsel %vm3005_vm7, %v1331_v2, %v1332_v47  ;;  %v1348_v47 = vsel %vm3005_vm7, %v1346_v31, %v1347_v6  ;;  %v3644_v2 = vor.u32 %v1547_v41, %v1544_v18  ;;  %v221_v8 = vld [vmem:[%s2992_s8 + $0x34] sm:$0xf] }
  0xa9   : > { %v1370_v56 = vpop.permute.xlu1 %1369  ;;  %v1345_v23 = vsel %vm3005_vm7, %v1343_v37, %v1344_v35  ;;  %v1580_v31 = vrot.slane %v1578_v57, 4  ;;  %v3658_v15 = vor.u32 %v1587_v10, %v1584_v26  ;;  %v320_v18 = vshll.u32 %v217_v49, 16  ;;  %v3692_v25 = vld [vmem:[%s2992_s8 + $0x40] sm:$0xf] }
  0xaa   : > { %1423 = vst.msk [vmem:[#allocation2 + $0x4] sm:$0xf] %vm1421_vm14, %v1370_v56  ;;  %v1368_v30 = vpop.permute.xlu0 %1367  ;;  %v1549_v35 = vsel %vm3115_vm15, %v1540_v13, %v3644_v2  ;;  %v324_v41 = vshrl.u32 %v217_v49, 16  ;;  %v314_v56 = vshrl.u32 %v3375_v54, 16  ;;  %v1539_v37 = vsel %vm3115_vm15, %v1530_v1, %v1538_v21 }
  0xab   : > { %1422 = vst.msk [vmem:[#allocation2] sm:$0xf] %vm1421_vm14, %v1368_v30  ;;  %1381 = vrot.lane.b32.xlu1 %v1336_v27, %s2893_s26  ;;  %v3669_v27 = vld [vmem:[%s2992_s8 + $0x3c] sm:$0xf]  ;;  %v1570_v55 = vrot.slane %v3652_v38, 4  ;;  %v354_v30 = vshrl.u32 %v3399_v58, 16  ;;  %v1589_v54 = vsel %vm3115_vm15, %v1580_v31, %v3658_v15 }
  0xac   : > { %1379 = vrot.lane.b32.xlu0 %v1333_v36, %s2893_s26  ;;  %v1787_v10 = vrot.slane %v3661_v5, 7  ;;  %v1786_v21 = vrot.slane %v1784_v24, 4  ;;  %v1783_v58 = vrot.slane %v1781_v53, 4  ;;  %v1796_v13 = vrot.slane %v3669_v27, 7  ;;  %v179_v53 = vld [vmem:[%s2992_s8 + $0x20] sm:$0xf] }
  0xad   : > { %v1653_v16 = vpop.permute.xlu1 %1652  ;;  %v360_v1 = vshll.u32 %v221_v8, 16  ;;  %v364_v49 = vshrl.u32 %v221_v8, 16  ;;  %198 = vst.msk [vmem:[#allocation2 + $0x20] sm:$0xf] %vm4444_vm4, %v179_v53 }
  0xae   : > { %1706 = vst.msk [vmem:[#allocation2 + $0x4] sm:$0xf] %vm4445_vm0, %v1653_v16  ;;  %v1651_v29 = vpop.permute.xlu0 %1650  ;;  %v3694_v16 = vrot.slane %v320_v18, 5  ;;  %v1799_v18 = vrot.slane %v3692_v25, 7  ;;  %v671_v25 = vld [vmem:[%s2992_s8 + $0x44] sm:$0xf] }
  0xaf   : > { %1705 = vst.msk [vmem:[#allocation2] sm:$0xf] %vm4445_vm0, %v1651_v29  ;;  %1389 = vrot.lane.b32.xlu1 %v1348_v47, %s2893_s26  ;;  %v3680_v47 = vld [vmem:[%s2992_s8 + $0x38] sm:$0xf] }
  0xb0   : > { %1387 = vrot.lane.b32.xlu0 %v1345_v23, %s2893_s26  ;;  %v326_v23 = vrot.slane %v324_v41, 4  ;;  %v1793_v31 = vrot.slane %v3680_v47, 7  ;;  %v1798_v41 = vrot.slane %v1796_v13, 4  ;;  %v1801_v47 = vrot.slane %v1799_v18, 4 }
  0xb1   : > { %v1822_v36 = vpop.permute.xlu1 %1821 }
  0xb2   : > { %1875 = vst.msk [vmem:[#allocation2 + $0x4] sm:$0xf] %vm4443_vm12, %v1822_v36  ;;  %v1820_v26 = vpop.permute.xlu0 %1819  ;;  %v316_v36 = vrot.slane %v314_v56, 4  ;;  %v327_v56 = vor.u32 %v326_v23, %v3694_v16  ;;  %v184_v23 = vld [vmem:[%s2992_s8 + $0x34] sm:$0xf] }
  0xb3   : > { %1874 = vst.msk [vmem:[#allocation2] sm:$0xf] %vm4443_vm12, %v1820_v26  ;;  %1664 = vrot.lane.b32.xlu1 %v1549_v35, %s2894_s28  ;;  %v1579_v35 = vsel %vm3115_vm15, %v1570_v55, %v1578_v57  ;;  %v1788_v57 = vsel %vm3130_vm1, %v1786_v21, %v1787_v10  ;;  %vm1975_vm12 = vcmask 293888   ;;  %v366_v55 = vrot.slane %v364_v49, 4 }
  0xb4   : > { %1662 = vrot.lane.b32.xlu0 %v1539_v37, %s2894_s28  ;;  %v3713_v37 = vrot.slane %v360_v1, 5  ;;  %v1785_v26 = vsel %vm3130_vm1, %v1783_v58, %v1784_v24  ;;  %v317_v21 = vor.u32 %v316_v36, %v3413_v17  ;;  %v183_v1 = vld [vmem:[%s2992_s8 + $0x30] sm:$0xf]  ;;  %v1800_v17 = vsel %vm3130_vm1, %v1798_v41, %v1799_v18  ;;  %203 = vst.msk [vmem:[#allocation2 + $0x34] sm:$0xf] %vm4444_vm4, %v184_v23 }
  0xb5   : > { %v421_v29 = vpop.permute.xlu1 %420  ;;  %v328_v24 = vrot.slane %v327_v56, 4  ;;  %202 = vst.msk [vmem:[#allocation2 + $0x30] sm:$0xf] %vm4444_vm4, %v183_v1  ;;  %v3765_v23 = vld [vmem:[%s2992_s8 + $0x38] sm:$0xf]  ;;  %vm4462_vm4 = vcmask 290048  }
  0xb6   : > { %472 = vst.msk [vmem:[#allocation2 + $0xc] sm:$0xf] %vm468_vm5, %v421_v29  ;;  %v419_v27 = vpop.permute.xlu0 %418  ;;  %v3721_v29 = vld [vmem:[%s2992_s8 + $0x38] sm:$0xf]  ;;  %v665_v1 = vld [vmem:[%s2992_s8 + $0x2c] sm:$0xf] }
  0xb7   : > { %471 = vst.msk [vmem:[#allocation2 + $0x8] sm:$0xf] %vm468_vm5, %v419_v27  ;;  %1672 = vrot.lane.b32.xlu1 %v1589_v54, %s2894_s28  ;;  %v1795_v54 = vrot.slane %v1793_v31, 4  ;;  %v370_v58 = vshll.u32 %v3721_v29, 16  ;;  %v318_v27 = vrot.slane %v317_v21, 4 }
  0xb8   : > { %1670 = vrot.lane.b32.xlu0 %v1579_v35, %s2894_s28  ;;  %v356_v35 = vrot.slane %v354_v30, 4  ;;  %v367_v30 = vor.u32 %v366_v55, %v3713_v37 }
  0xb9   : > { %v590_v8 = vpop.permute.xlu1 %589  ;;  %v1797_v36 = vsel %vm3130_vm1, %v1795_v54, %v1796_v13  ;;  %v333_v13 = vsel %vm3050_vm10, %v328_v24, %v3401_v9  ;;  %v323_v54 = vsel %vm3050_vm10, %v318_v27, %v3694_v16  ;;  %v720_v27 = vrot.slane %v665_v1, 5 }
  0xba   : > { %641 = vst.msk [vmem:[#allocation2 + $0xc] sm:$0xf] %vm637_vm6, %v590_v8  ;;  %v588_v28 = vpop.permute.xlu0 %587  ;;  %v2785_v53 = vld [vmem:[#allocation2] sm:$0xff]   ;;  %v368_v56 = vrot.slane %v367_v30, 4  ;;  %v553_v30 = vrot.slane %v551_v50, 4  ;;  %v719_v1 = vrot.slane %v717_v12, 4 }
  0xbb   : > { %640 = vst.msk [vmem:[#allocation2 + $0x8] sm:$0xf] %vm637_vm6, %v588_v28  ;;  %1833 = vrot.lane.b32.xlu1 %v1788_v57, %s2895_s29  ;;  %2622 = vmatmul.mubr.msk.bf16.vlgmr.msra.gmra.mxu0 %vm1975_vm12, %v2785_v53  ;;  %v357_v57 = vor.u32 %v356_v35, %v3441_v32  ;;  %v496_v8 = vld [vmem:[%s2992_s8 + $0x24] sm:$0xf]  ;;  %v3751_v32 = vrot.slane %v370_v58, 5  ;;  %v722_v7 = vrot.slane %v720_v27, 4 }
  0xbc   : > { %1831 = vrot.lane.b32.xlu0 %v1785_v26, %s2895_s29  ;;  %2625 = vmatprep.mubr.msk.bf16.mxu0 %vm2897_vm3, %v2896_v60  ;;  %v554_v55 = vrot.slane %v496_v8, 5  ;;  %v500_v35 = vld [vmem:[%s2992_s8 + $0x34] sm:$0xf]  ;;  %v831_v58 = vld [vmem:[%s2992_s8 + $0x2c] sm:$0xf] }
  0xbd   : > { %v756_v49 = vpop.permute.xlu1 %755  ;;  %v358_v21 = vrot.slane %v357_v57, 4  ;;  %v373_v9 = vsel %vm3050_vm10, %v368_v56, %v3751_v32  ;;  %v566_v16 = vrot.slane %v500_v35, 5  ;;  %v669_v57 = vld [vmem:[%s2992_s8 + $0x3c] sm:$0xf]  ;;  %v937_v8 = vshll.u32 %v831_v58, 16 }
  0xbe   : > { %807 = vst.msk [vmem:[#allocation2 + $0xc] sm:$0xf] %vm803_vm8, %v756_v49  ;;  %v754_v41 = vpop.permute.xlu0 %753  ;;  %v556_v53 = vrot.slane %v554_v55, 4  ;;  %v555_v56 = vsel %vm2994_vm2, %v553_v30, %v554_v55  ;;  %v4460_v30 = vrot.slane %v3494_v48, 5  ;;  %v4461_v48 = vrot.slane %v3501_v59, 5 }
  0xbf   : > { %806 = vst.msk [vmem:[#allocation2 + $0x8] sm:$0xf] %vm803_vm8, %v754_v41  ;;  %1841 = vrot.lane.b32.xlu1 %v1800_v17, %s2895_s29  ;;  %v363_v24 = vsel %vm3050_vm10, %v358_v21, %v3713_v37  ;;  %v568_v50 = vrot.slane %v566_v16, 4  ;;  %v934_v37 = vshrl.u32 %v831_v58, 16  ;;  %v835_v41 = vld [vmem:[%s2992_s8 + $0x3c] sm:$0xf] }
  0xc0   : > { %1839 = vrot.lane.b32.xlu0 %v1797_v36, %s2895_s29  ;;  %v569_v36 = vrot.slane %v3765_v23, 5  ;;  %v558_v40 = vsel %vm2994_vm2, %v556_v53, %v557_v42  ;;  %v732_v42 = vrot.slane %v669_v57, 5  ;;  %v974_v21 = vshrl.u32 %v835_v41, 16 }
  0xc1   : > { %v1039_v26 = vpop.permute.xlu1 %1038  ;;  %v939_v35 = vrot.slane %v937_v8, 6  ;;  %v724_v58 = vsel %vm2994_vm2, %v722_v7, %v4460_v30  ;;  %v735_v57 = vrot.slane %v3798_v44, 5  ;;  %v721_v8 = vsel %vm2994_vm2, %v719_v1, %v720_v27 }
  0xc2   : > { %1090 = vst.msk [vmem:[#allocation2 + $0xc] sm:$0xf] %vm1086_vm9, %v1039_v26  ;;  %v1037_v28 = vpop.permute.xlu0 %1036  ;;  %v565_v26 = vrot.slane %v563_v43, 4  ;;  %v570_v55 = vsel %vm2994_vm2, %v568_v50, %v569_v36  ;;  %v936_v43 = vrot.slane %v934_v37, 5 }
  0xc3   : > { %1089 = vst.msk [vmem:[#allocation2 + $0x8] sm:$0xf] %vm1086_vm9, %v1037_v28  ;;  %432 = vrot.lane.b32.xlu1 %v333_v13, %s2891_s24  ;;  %v977_v28 = vshll.u32 %v835_v41, 16  ;;  %v731_v41 = vrot.slane %v4461_v48, 4 }
  0xc4   : > { %430 = vrot.lane.b32.xlu0 %v323_v54, %s2891_s24  ;;  %v567_v53 = vsel %vm2994_vm2, %v565_v26, %v566_v16  ;;  %v976_v16 = vrot.slane %v974_v21, 5  ;;  %v940_v62 = vor.u32 %v939_v35, %v936_v43  ;;  %v1114_v43 = vld [vmem:[%s2992_s8 + $0x2c] sm:$0xf] }
  0xc5   : > { %v1208_v17 = vpop.permute.xlu1 %1207  ;;  %v979_v12 = vrot.slane %v977_v28, 6  ;;  %v733_v21 = vsel %vm2994_vm2, %v731_v41, %v732_v42 }
  0xc6   : > { %1259 = vst.msk [vmem:[#allocation2 + $0xc] sm:$0xf] %vm1255_vm13, %v1208_v17  ;;  %v1206_v49 = vpop.permute.xlu0 %1205  ;;  %v836_v17 = vld [vmem:[%s2992_s8 + $0x40] sm:$0xf]  ;;  %v942_v26 = vrot.slane %v940_v62, 4 }
  0xc7   : > { %1258 = vst.msk [vmem:[#allocation2 + $0x8] sm:$0xf] %vm1255_vm13, %v1206_v49  ;;  %440 = vrot.lane.b32.xlu1 %v373_v9, %s2891_s24  ;;  %v734_v49 = vrot.slane %v732_v42, 4  ;;  %v987_v50 = vshll.u32 %v836_v17, 16  ;;  %v1172_v42 = vrot.slane %v1114_v43, 6  ;;  %v4466_v43 = vrot.slane %v3557_v33, 6 }
  0xc8   : > { %438 = vrot.lane.b32.xlu0 %v363_v24, %s2891_s24  ;;  %v951_v28 = vsel %vm3072_vm11, %v942_v26, %v3530_v22 }
  0xc9   : > { %v1374_v13 = vpop.permute.xlu1 %1373  ;;  %v989_v59 = vrot.slane %v987_v50, 6 }
  0xca   : > { %1425 = vst.msk [vmem:[#allocation2 + $0xc] sm:$0xf] %vm1421_vm14, %v1374_v13  ;;  %v1372_v54 = vpop.permute.xlu0 %1371 }
  0xcb   : > { %1424 = vst.msk [vmem:[#allocation2 + $0x8] sm:$0xf] %vm1421_vm14, %v1372_v54  ;;  %601 = vrot.lane.b32.xlu1 %v558_v40, %s2889_s18  ;;  %v984_v40 = vshrl.u32 %v836_v17, 16  ;;  %v980_v54 = vor.u32 %v979_v12, %v976_v16  ;;  %v3852_v16 = vld [vmem:[%s2992_s8 + $0x40] sm:$0xf] }
  0xcc   : > { %599 = vrot.lane.b32.xlu0 %v555_v56, %s2889_s18  ;;  %v736_v56 = vsel %vm2994_vm2, %v734_v49, %v735_v57 }
  0xcd   : > { %v1657_v9 = vpop.permute.xlu1 %1656  ;;  %v986_v27 = vrot.slane %v984_v40, 5  ;;  %v4464_v40 = vrot.slane %v3549_v34, 6  ;;  %v4465_v34 = vrot.slane %v3553_v19, 6 }
  0xce   : > { %1708 = vst.msk [vmem:[#allocation2 + $0xc] sm:$0xf] %vm4445_vm0, %v1657_v9  ;;  %v1655_v24 = vpop.permute.xlu0 %1654  ;;  %v982_v9 = vrot.slane %v980_v54, 4 }
  0xcf   : > { %1707 = vst.msk [vmem:[#allocation2 + $0x8] sm:$0xf] %vm4445_vm0, %v1655_v24  ;;  %609 = vrot.lane.b32.xlu1 %v570_v55, %s2889_s18  ;;  %vm4463_vm0 = vmmov %vm4462_vm4  ;;  %v932_v55 = vrot.slane %v3524_v20, 4  ;;  %v1118_v20 = vld [vmem:[%s2992_s8 + $0x3c] sm:$0xf]  ;;  %v972_v24 = vrot.slane %v3543_v51, 4 }
  0xd0   : > { %607 = vrot.lane.b32.xlu0 %v567_v53, %s2889_s18  ;;  %v3837_v53 = vor.u32 %v989_v59, %v986_v27  ;;  %v1184_v22 = vrot.slane %v1118_v20, 6  ;;  %v1174_v51 = vrot.slane %v1172_v42, 4  ;;  %v1171_v50 = vrot.slane %v4464_v40, 4 }
  0xd1   : > { %v1826_v37 = vpop.permute.xlu1 %1825  ;;  %v941_v17 = vsel %vm3072_vm11, %v932_v55, %v940_v62  ;;  %v981_v12 = vsel %vm3072_vm11, %v972_v24, %v980_v54 }
  0xd2   : > { %1877 = vst.msk [vmem:[#allocation2 + $0xc] sm:$0xf] %vm4462_vm4, %v1826_v37  ;;  %v1824_v13 = vpop.permute.xlu0 %1823  ;;  %v991_v49 = vsel %vm3072_vm11, %v982_v9, %v3837_v53  ;;  %v1283_v37 = vld [vmem:[%s2992_s8 + $0x34] sm:$0xf]  ;;  %v1186_v41 = vrot.slane %v1184_v22, 4  ;;  %v1176_v26 = vsel %vm3005_vm7, %v1174_v51, %v4465_v34  ;;  %v1173_v55 = vsel %vm3005_vm7, %v1171_v50, %v1172_v42 }
  0xd3   : > { %1876 = vst.msk [vmem:[#allocation2 + $0x8] sm:$0xf] %vm4463_vm0, %v1824_v13  ;;  %767 = vrot.lane.b32.xlu1 %v724_v58, %s2888_s17  ;;  %v1187_v13 = vrot.slane %v3852_v16, 6  ;;  %v1338_v54 = vrot.slane %v1283_v37, 6  ;;  %v1454_v51 = vld [vmem:[%s2992_s8 + $0x48] sm:$0xf] }
  0xd4   : > { %765 = vrot.lane.b32.xlu0 %v721_v8, %s2888_s17  ;;  %v1449_v8 = vld [vmem:[%s2992_s8 + $0x34] sm:$0xf]  ;;  %vm4467_vm4 = vcmask 257248  }
  0xd5   : > { %v425_v7 = vpop.permute.xlu1 %424  ;;  %v1552_v27 = vshrl.u32 %v1449_v8, 16  ;;  %v1555_v59 = vshll.u32 %v1449_v8, 16  ;;  %v1188_v42 = vsel %vm3005_vm7, %v1186_v41, %v1187_v13  ;;  %v1340_v33 = vrot.slane %v1338_v54, 4  ;;  %vm4468_vm0 = vmmov %vm4467_vm4 }
  0xd6   : > { %474 = vst.msk [vmem:[#allocation2 + $0x14] sm:$0xf] %vm468_vm5, %v425_v7  ;;  %v423_v35 = vpop.permute.xlu0 %422  ;;  %v1453_v7 = vld [vmem:[%s2992_s8 + $0x44] sm:$0xf]  ;;  %v1605_v8 = vshll.u32 %v1454_v51, 16 }
  0xd7   : > { %473 = vst.msk [vmem:[#allocation2 + $0x10] sm:$0xf] %vm468_vm5, %v423_v35  ;;  %775 = vrot.lane.b32.xlu1 %v736_v56, %s2888_s17  ;;  %v1287_v56 = vld [vmem:[%s2992_s8 + $0x44] sm:$0xf]  ;;  %v1183_v35 = vrot.slane %v4466_v43, 4  ;;  %v1592_v9 = vshrl.u32 %v1453_v7, 16  ;;  %v1342_v3 = vsel %vm3005_vm7, %v1340_v33, %v1341_v14 }
  0xd8   : > { %773 = vrot.lane.b32.xlu0 %v733_v21, %s2888_s17  ;;  %v1350_v19 = vrot.slane %v1287_v56, 6  ;;  %v1595_v20 = vshll.u32 %v1453_v7, 16  ;;  %v1557_v24 = vrot.slane %v1555_v59, 7  ;;  %v1349_v56 = vrot.slane %v1347_v6, 4  ;;  %v1732_v6 = vld [vmem:[%s2992_s8 + $0x34] sm:$0xf] }
  0xd9   : > { %v594_v1 = vpop.permute.xlu1 %593  ;;  %v1594_v50 = vrot.slane %v1592_v9, 6  ;;  %v1607_v61 = vrot.slane %v1605_v8, 7  ;;  %v1550_v7 = vrot.slane %v3644_v2, 4  ;;  %v1736_v2 = vld [vmem:[%s2992_s8 + $0x44] sm:$0xf] }
  0xda   : > { %643 = vst.msk [vmem:[#allocation2 + $0x14] sm:$0xf] %vm637_vm6, %v594_v1  ;;  %v592_v30 = vpop.permute.xlu0 %591  ;;  %v2786_v58 = vld [vmem:[#allocation2 + $0x8] sm:$0xff]   ;;  %v1597_v37 = vrot.slane %v1595_v20, 7  ;;  %v1351_v59 = vsel %vm3005_vm7, %v1349_v56, %v1350_v19 }
  0xdb   : > { %642 = vst.msk [vmem:[#allocation2 + $0x10] sm:$0xf] %vm637_vm6, %v592_v30  ;;  %1050 = vrot.lane.b32.xlu1 %v951_v28, %s2892_s25  ;;  %2626 = vmatmul.mubr.msk.bf16.gmra.mxu0 %vm1975_vm12, %v2786_v58  ;;  %v3886_v1 = vld [vmem:[%s2992_s8 + $0x48] sm:$0xf]  ;;  %v1185_v58 = vsel %vm3005_vm7, %v1183_v35, %v1184_v22  ;;  %v1602_v22 = vshrl.u32 %v1454_v51, 16  ;;  %v1790_v35 = vrot.slane %v1732_v6, 7 }
  0xdc   : > { %1048 = vrot.lane.b32.xlu0 %v941_v17, %s2892_s25  ;;  %2629 = vmatprep.mubr.msk.bf16.mxu0 %vm2897_vm3, %v2896_v60  ;;  %v1554_v17 = vrot.slane %v1552_v27, 6  ;;  %v1353_v40 = vrot.slane %v3886_v1, 6  ;;  %v1598_v39 = vor.u32 %v1597_v37, %v1594_v50  ;;  %v3982_v6 = vld [vmem:[%s2992_s8 + $0x40] sm:$0xf] }
  0xdd   : > { %v760_v62 = vpop.permute.xlu1 %759 }
  0xde   : > { %809 = vst.msk [vmem:[#allocation2 + $0x14] sm:$0xf] %vm803_vm8, %v760_v62  ;;  %v758_v48 = vpop.permute.xlu0 %757  ;;  %v1600_v43 = vrot.slane %v1598_v39, 4 }
  0xdf   : > { %808 = vst.msk [vmem:[#allocation2 + $0x10] sm:$0xf] %vm803_vm8, %v758_v48  ;;  %1058 = vrot.lane.b32.xlu1 %v991_v49, %s2892_s25  ;;  %v1337_v49 = vrot.slane %v1335_v45, 4  ;;  %v1558_v45 = vor.u32 %v1557_v24, %v1554_v17  ;;  %v1590_v24 = vrot.slane %v3658_v15, 4  ;;  %v3944_v15 = vld [vmem:[%s2992_s8 + $0x40] sm:$0xf] }
  0xe0   : > { %1056 = vrot.lane.b32.xlu0 %v981_v12, %s2892_s25  ;;  %v1352_v12 = vrot.slane %v1350_v19, 4  ;;  %v390_v56 = vshll.u32 %v3944_v15, 16 }
  0xe1   : > { %v1043_v21 = vpop.permute.xlu1 %1042  ;;  %v1339_v41 = vsel %vm3005_vm7, %v1337_v49, %v1338_v54  ;;  %v1604_v54 = vrot.slane %v1602_v22, 6  ;;  %v1559_v17 = vsel %vm3115_vm15, %v1550_v7, %v1558_v45  ;;  %v1792_v49 = vrot.slane %v1790_v35, 4  ;;  %v185_v22 = vld [vmem:[%s2992_s8 + $0x38] sm:$0xf]  ;;  %v838_v7 = vld [vmem:[%s2992_s8 + $0x48] sm:$0xf] }
  0xe2   : > { %1092 = vst.msk [vmem:[#allocation2 + $0x14] sm:$0xf] %vm1086_vm9, %v1043_v21  ;;  %v1041_v28 = vpop.permute.xlu0 %1040  ;;  %v1354_v14 = vsel %vm3005_vm7, %v1352_v12, %v1353_v40  ;;  %v223_v21 = vld [vmem:[%s2992_s8 + $0x3c] sm:$0xf]  ;;  %v1599_v37 = vsel %vm3115_vm15, %v1590_v24, %v1598_v39  ;;  %v4003_v24 = vld [vmem:[%s2992_s8 + $0x48] sm:$0xf] }
  0xe3   : > { %1091 = vst.msk [vmem:[#allocation2 + $0x10] sm:$0xf] %vm1086_vm9, %v1041_v28  ;;  %1219 = vrot.lane.b32.xlu1 %v1176_v26, %s2890_s21  ;;  %v1560_v26 = vrot.slane %v1558_v45, 4  ;;  %v3926_v19 = vor.u32 %v1607_v61, %v1604_v54  ;;  %v380_v9 = vshll.u32 %v223_v21, 16  ;;  %v384_v20 = vshrl.u32 %v223_v21, 16 }
  0xe4   : > { %1217 = vrot.lane.b32.xlu0 %v1173_v55, %s2890_s21  ;;  %v186_v45 = vld [vmem:[%s2992_s8 + $0x3c] sm:$0xf]  ;;  %v1794_v5 = vsel %vm3130_vm1, %v1792_v49, %v1793_v31  ;;  %v837_v54 = vld [vmem:[%s2992_s8 + $0x44] sm:$0xf] }
  0xe5   : > { %v1212_v30 = vpop.permute.xlu1 %1211  ;;  %v1569_v28 = vsel %vm3115_vm15, %v1560_v26, %v3652_v38  ;;  %v3937_v38 = vld [vmem:[%s2992_s8 + $0x48] sm:$0xf]  ;;  %v3946_v51 = vrot.slane %v380_v9, 5  ;;  %v994_v21 = vshrl.u32 %v837_v54, 16 }
  0xe6   : > { %1261 = vst.msk [vmem:[#allocation2 + $0x14] sm:$0xf] %vm1255_vm13, %v1212_v30  ;;  %v1210_v62 = vpop.permute.xlu0 %1209 }
  0xe7   : > { %1260 = vst.msk [vmem:[#allocation2 + $0x10] sm:$0xf] %vm1255_vm13, %v1210_v62  ;;  %1227 = vrot.lane.b32.xlu1 %v1188_v42, %s2890_s21  ;;  %v374_v42 = vshrl.u32 %v3721_v29, 16  ;;  %v1609_v29 = vsel %vm3115_vm15, %v1600_v43, %v3926_v19  ;;  %v386_v62 = vrot.slane %v384_v20, 4  ;;  %v575_v20 = vrot.slane %v3982_v6, 5 }
  0xe8   : > { %1225 = vrot.lane.b32.xlu0 %v1185_v58, %s2890_s21  ;;  %v1802_v58 = vrot.slane %v1736_v2, 7  ;;  %v1122_v6 = vld [vmem:[%s2992_s8 + $0x4c] sm:$0xf] }
  0xe9   : > { %v1378_v48 = vpop.permute.xlu1 %1377  ;;  %v376_v12 = vrot.slane %v374_v42, 4  ;;  %v738_v42 = vrot.slane %v671_v25, 5 }
  0xea   : > { %1427 = vst.msk [vmem:[#allocation2 + $0x14] sm:$0xf] %vm1421_vm14, %v1378_v48  ;;  %v1376_v34 = vpop.permute.xlu0 %1375  ;;  %v1804_v48 = vrot.slane %v1802_v58, 4 }
  0xeb   : > { %1426 = vst.msk [vmem:[#allocation2 + $0x10] sm:$0xf] %vm1421_vm14, %v1376_v34  ;;  %1385 = vrot.lane.b32.xlu1 %v1342_v3, %s2893_s26  ;;  %v1789_v3 = vrot.slane %v1787_v10, 4  ;;  %v387_v10 = vor.u32 %v386_v62, %v3946_v51  ;;  %v502_v34 = vld [vmem:[%s2992_s8 + $0x3c] sm:$0xf]  ;;  %v377_v39 = vor.u32 %v376_v12, %v3751_v32  ;;  %v571_v12 = vrot.slane %v569_v36, 4 }
  0xec   : > { %1383 = vrot.lane.b32.xlu0 %v1339_v41, %s2893_s26  ;;  %v1805_v41 = vrot.slane %v3937_v38, 7 }
  0xed   : > { %v1661_v27 = vpop.permute.xlu1 %1660  ;;  %v1791_v26 = vsel %vm3130_vm1, %v1789_v3, %v1790_v35  ;;  %v388_v18 = vrot.slane %v387_v10, 4  ;;  %v1803_v35 = vsel %vm3130_vm1, %v1801_v47, %v1802_v58  ;;  %v741_v3 = vrot.slane %v4003_v24, 5  ;;  %v1289_v47 = vld [vmem:[%s2992_s8 + $0x4c] sm:$0xf]  ;;  %v1291_v24 = vld [vmem:[%s2992_s8 + $0x54] sm:$0xf] }
  0xee   : > { %1710 = vst.msk [vmem:[#allocation2 + $0x14] sm:$0xf] %vm4467_vm4, %v1661_v27  ;;  %v1659_v55 = vpop.permute.xlu0 %1658  ;;  %vm4469_vm4 = vcmask 290048   ;;  %v1806_v32 = vsel %vm3130_vm1, %v1804_v48, %v1805_v41  ;;  %v572_v27 = vrot.slane %v502_v34, 5  ;;  %v737_v10 = vrot.slane %v735_v57, 4 }
  0xef   : > { %1709 = vst.msk [vmem:[#allocation2 + $0x10] sm:$0xf] %vm4468_vm0, %v1659_v55  ;;  %1393 = vrot.lane.b32.xlu1 %v1354_v14, %s2893_s26  ;;  %vm4470_vm0 = vmmov %vm4469_vm4  ;;  %v997_v55 = vshll.u32 %v837_v54, 16 }
  0xf0   : > { %1391 = vrot.lane.b32.xlu0 %v1351_v59, %s2893_s26  ;;  %v3987_v59 = vrot.slane %v390_v56, 5  ;;  %v574_v9 = vrot.slane %v572_v27, 4 }
  0xf1   : > { %v1830_v33 = vpop.permute.xlu1 %1829  ;;  %v999_v58 = vrot.slane %v997_v55, 6  ;;  %v1356_v55 = vrot.slane %v1289_v47, 6  ;;  %v188_v47 = vld [vmem:[%s2992_s8 + $0x44] sm:$0xf] }
  0xf2   : > { %1879 = vst.msk [vmem:[#allocation2 + $0x14] sm:$0xf] %vm4469_vm4, %v1830_v33  ;;  %v1828_v30 = vpop.permute.xlu0 %1827  ;;  %vm4471_vm4 = vcmask 27648   ;;  %v1004_v33 = vshrl.u32 %v838_v7, 16 }
  0xf3   : > { %1878 = vst.msk [vmem:[#allocation2 + $0x10] sm:$0xf] %vm4470_vm0, %v1828_v30  ;;  %1668 = vrot.lane.b32.xlu1 %v1569_v28, %s2894_s28  ;;  %vm4472_vm0 = vmmov %vm4471_vm4  ;;  %v378_v28 = vrot.slane %v377_v39, 4  ;;  %v996_v30 = vrot.slane %v994_v21, 5  ;;  %v4048_v21 = vld [vmem:[%s2992_s8 + $0x50] sm:$0xf] }
  0xf4   : > { %1666 = vrot.lane.b32.xlu0 %v1559_v17, %s2894_s28  ;;  %205 = vst.msk [vmem:[#allocation2 + $0x3c] sm:$0xf] %vm4471_vm4, %v186_v45  ;;  %v393_v17 = vsel %vm3050_vm10, %v388_v18, %v3987_v59  ;;  %v1120_v45 = vld [vmem:[%s2992_s8 + $0x44] sm:$0xf]  ;;  %v1006_v36 = vrot.slane %v1004_v33, 5  ;;  %vm4473_vm4 = vmmov %vm4472_vm0 }
  0xf5   : > { %v429_v50 = vpop.permute.xlu1 %428  ;;  %204 = vst.msk [vmem:[#allocation2 + $0x38] sm:$0xf] %vm4472_vm0, %v185_v22  ;;  %v383_v62 = vsel %vm3050_vm10, %v378_v28, %v3946_v51  ;;  %v740_v51 = vrot.slane %v738_v42, 4  ;;  %v1000_v23 = vor.u32 %v999_v58, %v996_v30  ;;  %v1190_v34 = vrot.slane %v1120_v45, 6 }
  0xf6   : > { %476 = vst.msk [vmem:[#allocation2 + $0x1c] sm:$0xf] %vm468_vm5, %v429_v50  ;;  %v427_v8 = vpop.permute.xlu0 %426  ;;  %v1358_v58 = vrot.slane %v1356_v55, 4 }
  0xf7   : > { %475 = vst.msk [vmem:[#allocation2 + $0x18] sm:$0xf] %vm468_vm5, %v427_v8  ;;  %1676 = vrot.lane.b32.xlu1 %v1609_v29, %s2894_s28  ;;  %v1007_v29 = vshll.u32 %v838_v7, 16  ;;  %v1455_v8 = vld [vmem:[%s2992_s8 + $0x4c] sm:$0xf]  ;;  %v1002_v44 = vrot.slane %v1000_v23, 4 }
  0xf8   : > { %1674 = vrot.lane.b32.xlu0 %v1599_v37, %s2894_s28  ;;  %v576_v37 = vsel %vm2994_vm2, %v574_v9, %v575_v20  ;;  %v1612_v39 = vshrl.u32 %v1455_v8, 16  ;;  %v1615_v54 = vshll.u32 %v1455_v8, 16  ;;  %v1192_v18 = vrot.slane %v1190_v34, 4  ;;  %v225_v9 = vld [vmem:[%s2992_s8 + $0x44] sm:$0xf] }
  0xf9   : > { %v437_v14 = vpop.permute.xlu1 %436  ;;  %v1009_v22 = vrot.slane %v1007_v29, 6  ;;  %v1359_v29 = vrot.slane %v4048_v21, 6  ;;  %207 = vst.msk [vmem:[#allocation2 + $0x44] sm:$0xf] %vm4473_vm4, %v188_v47 }
  0xfa   : > { %480 = vst.msk [vmem:[#allocation2 + $0x2c] sm:$0xf] %vm468_vm5, %v437_v14  ;;  %v435_v31 = vpop.permute.xlu0 %434  ;;  %v2787_v61 = vld [vmem:[#allocation2 + $0x10] sm:$0xff]   ;;  %v742_v14 = vsel %vm2994_vm2, %v740_v51, %v741_v3 }
  0xfb   : > { %479 = vst.msk [vmem:[#allocation2 + $0x28] sm:$0xf] %vm468_vm5, %v435_v31  ;;  %1837 = vrot.lane.b32.xlu1 %v1794_v5, %s2895_s29  ;;  %2630 = vmatmul.mubr.msk.bf16.gmra.mxu0 %vm1975_vm12, %v2787_v61  ;;  %v573_v5 = vsel %vm2994_vm2, %v571_v12, %v572_v27  ;;  %v4033_v57 = vor.u32 %v1009_v22, %v1006_v36  ;;  %v1456_v27 = vld [vmem:[%s2992_s8 + $0x50] sm:$0xf]  ;;  %v1738_v36 = vld [vmem:[%s2992_s8 + $0x4c] sm:$0xf] }
  0xfc   : > { %1835 = vrot.lane.b32.xlu0 %v1791_v26, %s2895_s29  ;;  %2633 = vmatprep.mubr.msk.bf16.mxu0 %vm2897_vm3, %v2896_v60  ;;  %v4036_v26 = vld [vmem:[%s2992_s8 + $0x48] sm:$0xf]  ;;  %v739_v61 = vsel %vm2994_vm2, %v737_v10, %v738_v42  ;;  %v1622_v28 = vshrl.u32 %v1456_v27, 16  ;;  %v1360_v1 = vsel %vm3005_vm7, %v1358_v58, %v1359_v29  ;;  %v1808_v10 = vrot.slane %v1738_v36, 7 }
  0xfd   : > { %v598_v43 = vpop.permute.xlu1 %597  ;;  %v1193_v7 = vrot.slane %v4036_v26, 6 }
  0xfe   : > { %645 = vst.msk [vmem:[#allocation2 + $0x1c] sm:$0xf] %vm637_vm6, %v598_v43  ;;  %v596_v2 = vpop.permute.xlu0 %595  ;;  %v1614_v43 = vrot.slane %v1612_v39, 6  ;;  %v1624_v12 = vrot.slane %v1622_v28, 6  ;;  %v839_v28 = vld [vmem:[%s2992_s8 + $0x4c] sm:$0xf] }
  0xff   : > { %644 = vst.msk [vmem:[#allocation2 + $0x18] sm:$0xf] %vm637_vm6, %v596_v2  ;;  %1845 = vrot.lane.b32.xlu1 %v1806_v32, %s2895_s29  ;;  %v992_v32 = vrot.slane %v3837_v53, 4  ;;  %v1011_v53 = vsel %vm3072_vm11, %v1002_v44, %v4033_v57  ;;  %v1625_v2 = vshll.u32 %v1456_v27, 16  ;;  %v1194_v16 = vsel %vm3005_vm7, %v1192_v18, %v1193_v7  ;;  %v504_v18 = vld [vmem:[%s2992_s8 + $0x44] sm:$0xf] }
 0x100   : > { %1843 = vrot.lane.b32.xlu0 %v1803_v35, %s2895_s29  ;;  %v1617_v35 = vrot.slane %v1615_v54, 7  ;;  %v187_v54 = vld [vmem:[%s2992_s8 + $0x40] sm:$0xf]  ;;  %v1810_v27 = vrot.slane %v1808_v10, 4 }
 0x101   : > { %v606_v49 = vpop.permute.xlu1 %605  ;;  %v1001_v33 = vsel %vm3072_vm11, %v992_v32, %v1000_v23  ;;  %v1355_v23 = vrot.slane %v1353_v40, 4  ;;  %206 = vst.msk [vmem:[#allocation2 + $0x40] sm:$0xf] %vm4472_vm0, %v187_v54 }
 0x102   : > { %649 = vst.msk [vmem:[#allocation2 + $0x2c] sm:$0xf] %vm637_vm6, %v606_v49  ;;  %v604_v50 = vpop.permute.xlu0 %603  ;;  %v400_v49 = vshll.u32 %v225_v9, 16 }
 0x103   : > { %648 = vst.msk [vmem:[#allocation2 + $0x28] sm:$0xf] %vm637_vm6, %v604_v50  ;;  %444 = vrot.lane.b32.xlu1 %v393_v17, %s2891_s24  ;;  %v1189_v17 = vrot.slane %v1187_v13, 4  ;;  %v1618_v13 = vor.u32 %v1617_v35, %v1614_v43  ;;  %v1627_v50 = vrot.slane %v1625_v2, 7  ;;  %v1357_v39 = vsel %vm3005_vm7, %v1355_v23, %v1356_v55 }
 0x104   : > { %442 = vrot.lane.b32.xlu0 %v383_v62, %s2891_s24  ;;  %v404_v62 = vshrl.u32 %v225_v9, 16  ;;  %v4077_v8 = vrot.slane %v400_v49, 5 }
 0x105   : > { %v764_v48 = vpop.permute.xlu1 %763  ;;  %v1191_v51 = vsel %vm3005_vm7, %v1189_v17, %v1190_v34  ;;  %v1620_v40 = vrot.slane %v1618_v13, 4  ;;  %v1014_v17 = vshrl.u32 %v839_v28, 16 }
 0x106   : > { %811 = vst.msk [vmem:[#allocation2 + $0x1c] sm:$0xf] %vm803_vm8, %v764_v48  ;;  %v762_v56 = vpop.permute.xlu0 %761  ;;  %v4084_v48 = vor.u32 %v1627_v50, %v1624_v12 }
 0x107   : > { %810 = vst.msk [vmem:[#allocation2 + $0x18] sm:$0xf] %vm803_vm8, %v762_v56  ;;  %613 = vrot.lane.b32.xlu1 %v576_v37, %s2889_s18  ;;  %v394_v37 = vshrl.u32 %v3944_v15, 16  ;;  %v406_v15 = vrot.slane %v404_v62, 4  ;;  %v226_v56 = vld [vmem:[%s2992_s8 + $0x48] sm:$0x1] }
 0x108   : > { %611 = vrot.lane.b32.xlu0 %v573_v5, %s2889_s18  ;;  %v4087_v5 = vld [vmem:[%s2992_s8 + $0x50] sm:$0xf]  ;;  %v410_v32 = vshll.u32 %v226_v56, 16  ;;  %v1016_v23 = vrot.slane %v1014_v17, 5 }
 0x109   : > { %v772_v31 = vpop.permute.xlu1 %771  ;;  %v396_v44 = vrot.slane %v394_v37, 4 }
 0x10a   : > { %815 = vst.msk [vmem:[#allocation2 + $0x2c] sm:$0xf] %vm803_vm8, %v772_v31  ;;  %v770_v25 = vpop.permute.xlu0 %769 }
 0x10b   : > { %814 = vst.msk [vmem:[#allocation2 + $0x28] sm:$0xf] %vm803_vm8, %v770_v25  ;;  %779 = vrot.lane.b32.xlu1 %v742_v14, %s2888_s17  ;;  %v1610_v14 = vrot.slane %v3926_v19, 4  ;;  %v1629_v19 = vsel %vm3115_vm15, %v1620_v40, %v4084_v48  ;;  %v1811_v25 = vrot.slane %v4087_v5, 7  ;;  %v397_v35 = vor.u32 %v396_v44, %v3987_v59  ;;  %v673_v59 = vld [vmem:[%s2992_s8 + $0x4c] sm:$0xf] }
 0x10c   : > { %777 = vrot.lane.b32.xlu0 %v739_v61, %s2888_s17  ;;  %v407_v61 = vor.u32 %v406_v15, %v4077_v8 }
 0x10d   : > { %v1047_v42 = vpop.permute.xlu1 %1046  ;;  %v1619_v43 = vsel %vm3115_vm15, %v1610_v14, %v1618_v13  ;;  %v1812_v38 = vsel %vm3130_vm1, %v1810_v27, %v1811_v25  ;;  %v398_v62 = vrot.slane %v397_v35, 4 }
 0x10e   : > { %1094 = vst.msk [vmem:[#allocation2 + $0x1c] sm:$0xf] %vm1086_vm9, %v1047_v42  ;;  %v1045_v30 = vpop.permute.xlu0 %1044  ;;  %v408_v9 = vrot.slane %v407_v61, 4  ;;  %v412_v42 = vrot.slane %v410_v32, 5  ;;  %v1196_v32 = vrot.slane %v1122_v6, 6 }
 0x10f   : > { %1093 = vst.msk [vmem:[#allocation2 + $0x18] sm:$0xf] %vm1086_vm9, %v1045_v30  ;;  %1062 = vrot.lane.b32.xlu1 %v1011_v53, %s2892_s25  ;;  %v1807_v53 = vrot.slane %v1805_v41, 4  ;;  %v505_v41 = vld [vmem:[%s2992_s8 + $0x48] sm:$0x1]  ;;  %v1017_v30 = vshll.u32 %v839_v28, 16  ;;  %v403_v40 = vsel %vm3050_vm10, %v398_v62, %v4077_v8 }
 0x110   : > { %1060 = vrot.lane.b32.xlu0 %v1001_v33, %s2892_s25  ;;  %v578_v33 = vrot.slane %v504_v18, 5  ;;  %v413_v12 = vsel %vm3050_vm10, %v408_v9, %v412_v42  ;;  %v581_v37 = vrot.slane %v505_v41, 5  ;;  %vm4474_vm10 = vcmask 257248  }
 0x111   : > { %v1055_v45 = vpop.permute.xlu1 %1054  ;;  %v1809_v49 = vsel %vm3130_vm1, %v1807_v53, %v1808_v10  ;;  %v1019_v36 = vrot.slane %v1017_v30, 6  ;;  %v577_v10 = vrot.slane %v575_v20, 4  ;;  %v1457_v20 = vld [vmem:[%s2992_s8 + $0x54] sm:$0xf]  ;;  %vm4475_vm4 = vmmov %vm4474_vm10  ;;  %v1012_v28 = vrot.slane %v4033_v57, 4 }
 0x112   : > { %1098 = vst.msk [vmem:[#allocation2 + $0x2c] sm:$0xf] %vm1086_vm9, %v1055_v45  ;;  %v1053_v22 = vpop.permute.xlu0 %1052  ;;  %v580_v50 = vrot.slane %v578_v33, 4  ;;  %v744_v45 = vrot.slane %v673_v59, 5  ;;  %vm4476_vm0 = vmmov %vm4475_vm4  ;;  %v1198_v42 = vrot.slane %v1196_v32, 4  ;;  %v1195_v62 = vrot.slane %v1193_v7, 4 }
 0x113   : > { %1097 = vst.msk [vmem:[#allocation2 + $0x28] sm:$0xf] %vm1086_vm9, %v1053_v22  ;;  %1231 = vrot.lane.b32.xlu1 %v1194_v16, %s2890_s21  ;;  %v840_v16 = vld [vmem:[%s2992_s8 + $0x50] sm:$0x3]  ;;  %v1020_v44 = vor.u32 %v1019_v36, %v1016_v23  ;;  %v579_v54 = vsel %vm2994_vm2, %v577_v10, %v578_v33  ;;  %v1292_v59 = vld [vmem:[%s2992_s8 + $0x58] sm:$0x3] }
 0x114   : > { %1229 = vrot.lane.b32.xlu0 %v1191_v51, %s2890_s21  ;;  %v674_v51 = vld [vmem:[%s2992_s8 + $0x50] sm:$0x1]  ;;  %v1024_v22 = vshrl.u32 %v840_v16, 16  ;;  %v1027_v15 = vshll.u32 %v840_v16, 16  ;;  %v582_v14 = vsel %vm2994_vm2, %v580_v50, %v581_v37  ;;  %v1197_v7 = vsel %vm3005_vm7, %v1195_v62, %v1196_v32  ;;  %v1740_v23 = vld [vmem:[%s2992_s8 + $0x54] sm:$0xf] }
 0x115   : > { %v1216_v34 = vpop.permute.xlu1 %1215  ;;  %v1022_v18 = vrot.slane %v1020_v44, 4 }
 0x116   : > { %1263 = vst.msk [vmem:[#allocation2 + $0x1c] sm:$0xf] %vm1255_vm13, %v1216_v34  ;;  %v1214_v31 = vpop.permute.xlu0 %1213  ;;  %v746_v34 = vrot.slane %v744_v45, 4  ;;  %v1026_v46 = vrot.slane %v1024_v22, 5  ;;  %v1029_v8 = vrot.slane %v1027_v15, 6 }
 0x117   : > { %1262 = vst.msk [vmem:[#allocation2 + $0x18] sm:$0xf] %vm1255_vm13, %v1214_v31  ;;  %1397 = vrot.lane.b32.xlu1 %v1360_v1, %s2893_s26  ;;  %v743_v31 = vrot.slane %v741_v3, 4  ;;  %v1635_v3 = vshll.u32 %v1457_v20, 16 }
 0x118   : > { %1395 = vrot.lane.b32.xlu0 %v1357_v39, %s2893_s26  ;;  %v747_v39 = vrot.slane %v674_v51, 5  ;;  %v1361_v51 = vrot.slane %v1359_v29, 4  ;;  %v1630_v29 = vrot.slane %v4084_v48, 4 }
 0x119   : > { %v1224_v55 = vpop.permute.xlu1 %1223  ;;  %v745_v35 = vsel %vm2994_vm2, %v743_v31, %v744_v45  ;;  %v1637_v17 = vrot.slane %v1635_v3, 7 }
 0x11a   : > { %1267 = vst.msk [vmem:[#allocation2 + $0x2c] sm:$0xf] %vm1255_vm13, %v1224_v55  ;;  %v1222_v2 = vpop.permute.xlu0 %1221  ;;  %v748_v27 = vsel %vm2994_vm2, %v746_v34, %v747_v39  ;;  %v1030_v55 = vor.u32 %v1029_v8, %v1026_v46  ;;  %vm4478_vm2 = vcmask 290048   ;;  %v1813_v8 = vrot.slane %v1811_v25, 4 }
 0x11b   : > { %1266 = vst.msk [vmem:[#allocation2 + $0x28] sm:$0xf] %vm1255_vm13, %v1222_v2  ;;  %1680 = vrot.lane.b32.xlu1 %v1629_v19, %s2894_s28  ;;  %v1632_v19 = vshrl.u32 %v1457_v20, 16  ;;  %v1458_v2 = vld [vmem:[%s2992_s8 + $0x58] sm:$0x7] }
 0x11c   : > { %1678 = vrot.lane.b32.xlu0 %v1619_v43, %s2894_s28  ;;  %v1123_v43 = vld [vmem:[%s2992_s8 + $0x50] sm:$0x3]  ;;  %v1031_v0 = vsel %vm3072_vm11, %v1022_v18, %v1030_v55  ;;  %v1642_v57 = vshrl.u32 %v1458_v2, 16  ;;  %v1645_v30 = vshll.u32 %v1458_v2, 16 }
 0x11d   : > { %v1382_v58 = vpop.permute.xlu1 %1381  ;;  %v1199_v33 = vrot.slane %v1123_v43, 6  ;;  %v1634_v41 = vrot.slane %v1632_v19, 6 }
 0x11e   : > { %1429 = vst.msk [vmem:[#allocation2 + $0x1c] sm:$0xf] %vm1421_vm14, %v1382_v58  ;;  %v1380_v13 = vpop.permute.xlu0 %1379  ;;  %v1644_v37 = vrot.slane %v1642_v57, 6  ;;  %v1647_v45 = vrot.slane %v1645_v30, 7 }
 0x11f   : > { %1428 = vst.msk [vmem:[#allocation2 + $0x18] sm:$0xf] %vm1421_vm14, %v1380_v13  ;;  %1849 = vrot.lane.b32.xlu1 %v1812_v38, %s2895_s29  ;;  %v1362_v38 = vrot.slane %v1291_v24, 6  ;;  %v1200_v50 = vsel %vm3005_vm7, %v1198_v42, %v1199_v33  ;;  %v1638_v4 = vor.u32 %v1637_v17, %v1634_v41 }
 0x120   : > { %1847 = vrot.lane.b32.xlu0 %v1809_v49, %s2895_s29  ;;  %v1021_v49 = vsel %vm3072_vm11, %v1012_v28, %v1020_v44  ;;  %vm4480_vm11 = vmmov %vm4478_vm2 }
 0x121   : > { %v1390_v1 = vpop.permute.xlu1 %1389  ;;  %v1364_v13 = vrot.slane %v1362_v38, 4  ;;  %v1640_v15 = vrot.slane %v1638_v4, 4  ;;  %v1363_v21 = vsel %vm3005_vm7, %v1361_v51, %v1362_v38  ;;  %v1639_v48 = vsel %vm3115_vm15, %v1630_v29, %v1638_v4 }
 0x122   : > { %1433 = vst.msk [vmem:[#allocation2 + $0x2c] sm:$0xf] %vm1421_vm14, %v1390_v1  ;;  %v1388_v56 = vpop.permute.xlu0 %1387  ;;  %v1648_v1 = vor.u32 %v1647_v45, %v1644_v37 }
 0x123   : > { %1432 = vst.msk [vmem:[#allocation2 + $0x28] sm:$0xf] %vm1421_vm14, %v1388_v56  ;;  %448 = vrot.lane.b32.xlu1 %v413_v12, %s2891_s24  ;;  %v1365_v12 = vrot.slane %v1292_v59, 6  ;;  %v1741_v56 = vld [vmem:[%s2992_s8 + $0x58] sm:$0x7]  ;;  %s158_s8 = sand.u32 1, %s2862_s10  }
 0x124   : > { %446 = vrot.lane.b32.xlu0 %v403_v40, %s2891_s24  ;;  %v1814_v40 = vrot.slane %v1740_v23, 7  ;;  %v1817_v44 = vrot.slane %v1741_v56, 7 }
 0x125   : > { %v1665_v47 = vpop.permute.xlu1 %1664  ;;  %v1366_v22 = vsel %vm3005_vm7, %v1364_v13, %v1365_v12 }
 0x126   : > { %1712 = vst.msk [vmem:[#allocation2 + $0x1c] sm:$0xf] %vm4474_vm10, %v1665_v47  ;;  %v1663_v61 = vpop.permute.xlu0 %1662  ;;  %vm4477_vm10 = vmmov %vm4476_vm0  ;;  %v1816_v11 = vrot.slane %v1814_v40, 4  ;;  %v1815_v25 = vsel %vm3130_vm1, %v1813_v8, %v1814_v40 }
 0x127   : > { %1711 = vst.msk [vmem:[#allocation2 + $0x18] sm:$0xf] %vm4475_vm4, %v1663_v61  ;;  %617 = vrot.lane.b32.xlu1 %v582_v14, %s2889_s18  ;;  %vm4479_vm4 = vmmov %vm4478_vm2  ;;  %v1649_v14 = vsel %vm3115_vm15, %v1640_v15, %v1648_v1 }
 0x128   : > { %615 = vrot.lane.b32.xlu0 %v579_v54, %s2889_s18  ;;  %v1818_v52 = vsel %vm3130_vm1, %v1816_v11, %v1817_v44  ;;  %vm4482_vm7 = vmmov %vm4477_vm10  ;;  %s2599_s18 = sshll.u32 %s2874_s13, 1  ;;  %s2469_s13 = scalar_lea.sflag [#allocation4], %s158_s8 }
 0x129   : > { %v1673_v53 = vpop.permute.xlu1 %1672  ;;  %vm4483_vm15 = vmmov %vm4482_vm7 }
 0x12a   : > { %1716 = vst.msk [vmem:[#allocation2 + $0x2c] sm:$0xf] %vm4476_vm0, %v1673_v53  ;;  %v1671_v9 = vpop.permute.xlu0 %1670  ;;  %vm4481_vm0 = vmmov %vm4478_vm2 }
 0x12b   : > { %1715 = vst.msk [vmem:[#allocation2 + $0x28] sm:$0xf] %vm4477_vm10, %v1671_v9  ;;  %783 = vrot.lane.b32.xlu1 %v748_v27, %s2888_s17  ;;  %v2112_v9 = vlaneseq  ;;  %vm4484_vm1 = vmmov %vm4482_vm7 }
 0x12c   : > { %781 = vrot.lane.b32.xlu0 %v745_v35, %s2888_s17  ;;  %vm4485_vm10 = vmmov %vm4484_vm1  ;;  %s2570_s17 = sshll.u32 %s158_s8, 1 }
 0x12d   : > { %v1834_v58 = vpop.permute.xlu1 %1833  ;;  %v4240_v38 = vshrl.u32 %v2112_v9, 7 }
 0x12e   : > { %1881 = vst.msk [vmem:[#allocation2 + $0x1c] sm:$0xf] %vm4478_vm2, %v1834_v58  ;;  %v1832_v16 = vpop.permute.xlu0 %1831  ;;  %vm4486_vm2 = vmmov %vm4481_vm0 }
 0x12f   : > { %1880 = vst.msk [vmem:[#allocation2 + $0x18] sm:$0xf] %vm4479_vm4, %v1832_v16  ;;  %1066 = vrot.lane.b32.xlu1 %v1031_v0, %s2892_s25  ;;  %v2114_v59 = vadd.s32 8, %v4240_v38  ;;  %v4246_v17 = vmul.u32.u64.low 3817748708, %v4240_v38  ;;  %v4247_v57 = vmul.u32.u64.high 3817748708, %v4240_v38, %v4246_v17  ;;  %vm4487_vm4 = vmmov %vm4481_vm0 }
 0x130   : > { %1064 = vrot.lane.b32.xlu0 %v1021_v49, %s2892_s25  ;;  %s160_s25 = scalar_lea.vmem [#allocation3], %s2570_s17 }
 0x131   : > { %v1842_v26 = vpop.permute.xlu1 %1841  ;;  %v4250_v49 = vmul.u32.u64.low 3817748708, %v2114_v59  ;;  %v4251_v62 = vmul.u32.u64.high 3817748708, %v2114_v59, %v4250_v49  ;;  %v2137_v12 = vshrl.u32 %v4247_v57, 4 }
 0x132   : > { %1885 = vst.msk [vmem:[#allocation2 + $0x2c] sm:$0xf] %vm4480_vm11, %v1842_v26  ;;  %v1840_v36 = vpop.permute.xlu0 %1839  ;;  %vm4488_vm11 = vmmov %vm4481_vm0 }
 0x133   : > { %1884 = vst.msk [vmem:[#allocation2 + $0x28] sm:$0xf] %vm4481_vm0, %v1840_v36  ;;  %1235 = vrot.lane.b32.xlu1 %v1200_v50, %s2890_s21  ;;  %v2148_v37 = vshrl.u32 %v4251_v62, 4  ;;  %v2138_v45 = vmul.u32 18, %v2137_v12 }
 0x134   : > { %1233 = vrot.lane.b32.xlu0 %v1197_v7, %s2890_s21  ;;  %s2480_s21 = sadd.s32 %s2870_s12, %s2599_s18 }
 0x135   : > { %v433_v10 = vpop.permute.xlu1 %432  ;;  %v2149_v23 = vmul.u32 18, %v2148_v37  ;;  %v2139_v36 = vsub.s32 %v4240_v38, %v2138_v45  ;;  %s2600_s24 = sshll.u32 %s2480_s21, 5 }
 0x136   : > { %478 = vst.msk [vmem:[#allocation2 + $0x24] sm:$0xf] %vm468_vm5, %v433_v10  ;;  %v431_v34 = vpop.permute.xlu0 %430  ;;  %v2788_v39 = vld [vmem:[#allocation2 + $0x18] sm:$0xff]   ;;  %s4387_s30 = scalar_lea.hbm %s4436_s2, %s2600_s24 }
 0x137   : > { %477 = vst.msk [vmem:[#allocation2 + $0x20] sm:$0xf] %vm468_vm5, %v431_v34  ;;  %1401 = vrot.lane.b32.xlu1 %v1366_v22, %s2893_s26  ;;  %2634 = vmatmul.mubr.msk.bf16.gmra.mxu0 %vm1975_vm12, %v2788_v39  ;;  %v2150_v40 = vsub.s32 %v2114_v59, %v2149_v23 }
 0x138   : > { %1399 = vrot.lane.b32.xlu0 %v1363_v21, %s2893_s26  ;;  %2637 = vmatprep.mubr.msk.bf16.mxu0 %vm2897_vm3, %v2896_v60  ;;  %s2484_s26 = sshll.u32 %s160_s25, 4  ;;  %s2485_s26 = int_to_ptr.vmem [resolvable:$true] %s2484_s26 }
 0x139   : > { %v441_v46 = vpop.permute.xlu1 %440  ;;  %s2794_s12 = scalar_lea.vmem %s2485_s26, 32  ;;  %p2801_p4 = scmp.lt.s32.totalorder %s2485_s26, %s2799_s4 }
 0x13a   : > { %482 = vst.msk [vmem:[#allocation2 + $0x34] sm:$0xf] %vm468_vm5, %v441_v46  ;;  %v439_v6 = vpop.permute.xlu0 %438  ;;  %v2789_v20 = vld [vmem:[#allocation2 + $0x28] sm:$0xff]   ;;  %p2795_p0 = scmp.ne.s32.totalorder %s2485_s26, %s2794_s12  ;;  %p2802_p5 = scmp.lt.s32.totalorder %s2800_s5, %s2794_s12 }
 0x13b   : > { %481 = vst.msk [vmem:[#allocation2 + $0x30] sm:$0xf] %vm468_vm5, %v439_v6  ;;  %1684 = vrot.lane.b32.xlu1 %v1649_v14, %s2894_s28  ;;  %2642 = vmatmul.mubr.msk.bf16.vlgmr.msra.gmra.mxu1 %vm1975_vm12, %v2789_v20  ;;  %v2115_v20 = vadd.s32 16, %v4240_v38 }
 0x13c   : > { %1682 = vrot.lane.b32.xlu0 %v1639_v48, %s2894_s28  ;;  %2645 = vmatprep.mubr.msk.bf16.mxu1 %vm2897_vm3, %v2896_v60  ;;  %p2796_p1 = pnand %p2795_p0, %p2965_p3  ;;  %p2803_p6 = por %p2802_p5, %p2801_p4 }
 0x13d   : > { %v602_v5 = vpop.permute.xlu1 %601 }
 0x13e   : > { %647 = vst.msk [vmem:[#allocation2 + $0x24] sm:$0xf] %vm637_vm6, %v602_v5  ;;  %v600_v47 = vpop.permute.xlu0 %599  ;;  %p2797_p2 = pneg %p2796_p1 }
 0x13f   : > { %646 = vst.msk [vmem:[#allocation2 + $0x20] sm:$0xf] %vm637_vm6, %v600_v47  ;;  %1853 = vrot.lane.b32.xlu1 %v1818_v52, %s2895_s29 }
 0x140   : > { %1851 = vrot.lane.b32.xlu0 %v1815_v25, %s2895_s29  ;;  %p2804_p7 = pnand %p2803_p6, %p2797_p2 }
 0x141   : > { %v610_v54 = vpop.permute.xlu1 %609 }
 0x142   : > { %651 = vst.msk [vmem:[#allocation2 + $0x34] sm:$0xf] %vm637_vm6, %v610_v54  ;;  %v608_v31 = vpop.permute.xlu0 %607  ;;  %v4275_v47 = vmul.u32.u64.low 3817748708, %v2115_v20  ;;  %v4276_v54 = vmul.u32.u64.high 3817748708, %v2115_v20, %v4275_v47 }
 0x143   : > { %650 = vst.msk [vmem:[#allocation2 + $0x30] sm:$0xf] %vm637_vm6, %v608_v31  ;;  %v2116_v31 = vadd.s32 24, %v4240_v38 }
 0x145   : > { %v768_v63 = vpop.permute.xlu1 %767 }
 0x146   : > { %813 = vst.msk [vmem:[#allocation2 + $0x24] sm:$0xf] %vm803_vm8, %v768_v63  ;;  %v766_v61 = vpop.permute.xlu0 %765 }
 0x147   : > { %812 = vst.msk [vmem:[#allocation2 + $0x20] sm:$0xf] %vm803_vm8, %v766_v61 }
 0x149   : > { %v776_v32 = vpop.permute.xlu1 %775 }
 0x14a   : > { %817 = vst.msk [vmem:[#allocation2 + $0x34] sm:$0xf] %vm803_vm8, %v776_v32  ;;  %v774_v19 = vpop.permute.xlu0 %773 }
 0x14b   : > { %816 = vst.msk [vmem:[#allocation2 + $0x30] sm:$0xf] %vm803_vm8, %v774_v19  ;;  %v4281_v32 = vmul.u32.u64.low 3817748708, %v2116_v31  ;;  %v4282_v19 = vmul.u32.u64.high 3817748708, %v2116_v31, %v4281_v32 }
 0x14d   : > { %v1051_v27 = vpop.permute.xlu1 %1050 }
 0x14e   : > { %1096 = vst.msk [vmem:[#allocation2 + $0x24] sm:$0xf] %vm1086_vm9, %v1051_v27  ;;  %v1049_v18 = vpop.permute.xlu0 %1048 }
 0x14f   : > { %1095 = vst.msk [vmem:[#allocation2 + $0x20] sm:$0xf] %vm1086_vm9, %v1049_v18 }
 0x151   : > { %v1059_v55 = vpop.permute.xlu1 %1058 }
 0x152   : > { %1100 = vst.msk [vmem:[#allocation2 + $0x34] sm:$0xf] %vm1086_vm9, %v1059_v55  ;;  %v1057_v43 = vpop.permute.xlu0 %1056  ;;  %v2159_v55 = vshrl.u32 %v4276_v54, 4 }
 0x153   : > { %1099 = vst.msk [vmem:[#allocation2 + $0x30] sm:$0xf] %vm1086_vm9, %v1057_v43 }
 0x155   : > { %v1220_v24 = vpop.permute.xlu1 %1219 }
 0x156   : > { %1265 = vst.msk [vmem:[#allocation2 + $0x24] sm:$0xf] %vm1255_vm13, %v1220_v24  ;;  %v1218_v3 = vpop.permute.xlu0 %1217 }
 0x157   : > { %1264 = vst.msk [vmem:[#allocation2 + $0x20] sm:$0xf] %vm1255_vm13, %v1218_v3  ;;  %v2160_v3 = vmul.u32 18, %v2159_v55 }
 0x159   : > { %v1228_v53 = vpop.permute.xlu1 %1227 }
 0x15a   : > { %1269 = vst.msk [vmem:[#allocation2 + $0x34] sm:$0xf] %vm1255_vm13, %v1228_v53  ;;  %v1226_v35 = vpop.permute.xlu0 %1225  ;;  %v2170_v53 = vshrl.u32 %v4282_v19, 4 }
 0x15b   : > { %1268 = vst.msk [vmem:[#allocation2 + $0x30] sm:$0xf] %vm1255_vm13, %v1226_v35 }
 0x15c   : > { %v2171_v9 = vmul.u32 18, %v2170_v53 }
 0x15d   : > { %v1386_v28 = vpop.permute.xlu1 %1385 }
 0x15e   : > { %1431 = vst.msk [vmem:[#allocation2 + $0x24] sm:$0xf] %vm1421_vm14, %v1386_v28  ;;  %v1384_v2 = vpop.permute.xlu0 %1383 }
 0x15f   : > { %1430 = vst.msk [vmem:[#allocation2 + $0x20] sm:$0xf] %vm1421_vm14, %v1384_v2  ;;  %v2161_v2 = vsub.s32 %v2115_v20, %v2160_v3 }
 0x161   : > { %v1394_v42 = vpop.permute.xlu1 %1393 }
 0x162   : > { %1435 = vst.msk [vmem:[#allocation2 + $0x34] sm:$0xf] %vm1421_vm14, %v1394_v42  ;;  %v1392_v33 = vpop.permute.xlu0 %1391 }
 0x163   : > { %1434 = vst.msk [vmem:[#allocation2 + $0x30] sm:$0xf] %vm1421_vm14, %v1392_v33 }
 0x165   : > { %v1669_v41 = vpop.permute.xlu1 %1668 }
 0x166   : > { %1714 = vst.msk [vmem:[#allocation2 + $0x24] sm:$0xf] %vm4482_vm7, %v1669_v41  ;;  %v1667_v0 = vpop.permute.xlu0 %1666  ;;  %vm2329_vm7 = vcmp.lt.s32.totalorder %v2139_v36, 16 }
 0x167   : > { %1713 = vst.msk [vmem:[#allocation2 + $0x20] sm:$0xf] %vm4483_vm15, %v1667_v0  ;;  %vm2330_vm15 = vcmp.lt.s32.totalorder %v2150_v40, 16  ;;  %v2172_v0 = vsub.s32 %v2116_v31, %v2171_v9 }
 0x169   : > { %v1677_v30 = vpop.permute.xlu1 %1676 }
 0x16a   : > { %1718 = vst.msk [vmem:[#allocation2 + $0x34] sm:$0xf] %vm4484_vm1, %v1677_v30  ;;  %v1675_v58 = vpop.permute.xlu0 %1674 }
 0x16b   : > { %1717 = vst.msk [vmem:[#allocation2 + $0x30] sm:$0xf] %vm4485_vm10, %v1675_v58  ;;  %vm4489_vm10 = vmmov %vm4484_vm1 }
 0x16d   : > { %v1838_v16 = vpop.permute.xlu1 %1837 }
 0x16e   : > { %1883 = vst.msk [vmem:[#allocation2 + $0x24] sm:$0xf] %vm4486_vm2, %v1838_v16  ;;  %v1836_v13 = vpop.permute.xlu0 %1835  ;;  %vm4490_vm2 = vmmov %vm4481_vm0 }
 0x16f   : > { %1882 = vst.msk [vmem:[#allocation2 + $0x20] sm:$0xf] %vm4487_vm4, %v1836_v13  ;;  %vm4491_vm4 = vmmov %vm4481_vm0 }
 0x171   : > { %v1846_v50 = vpop.permute.xlu1 %1845 }
 0x172   : > { %1887 = vst.msk [vmem:[#allocation2 + $0x34] sm:$0xf] %vm4488_vm11, %v1846_v50  ;;  %v1844_v4 = vpop.permute.xlu0 %1843  ;;  %vm2331_vm11 = vcmp.lt.s32.totalorder %v2161_v2, 16 }
 0x173   : > { %1886 = vst.msk [vmem:[#allocation2 + $0x30] sm:$0xf] %vm4481_vm0, %v1844_v4 }
 0x175   : > { %v445_v26 = vpop.permute.xlu1 %444 }
 0x176   : > { %484 = vst.msk [vmem:[#allocation2 + $0x3c] sm:$0xf] %vm468_vm5, %v445_v26  ;;  %v443_v7 = vpop.permute.xlu0 %442  ;;  %v2790_v51 = vld [vmem:[#allocation2 + $0x20] sm:$0xff]  }
 0x177   : > { %483 = vst.msk [vmem:[#allocation2 + $0x38] sm:$0xf] %vm468_vm5, %v443_v7  ;;  %2638 = vmatmul.mubr.msk.bf16.gmra.mxu0 %vm1975_vm12, %v2790_v51 }
 0x179   : > { %v614_v22 = vpop.permute.xlu1 %613 }
 0x17a   : > { %653 = vst.msk [vmem:[#allocation2 + $0x3c] sm:$0xf] %vm637_vm6, %v614_v22  ;;  %v612_v15 = vpop.permute.xlu0 %611  ;;  %v2791_v1 = vld [vmem:[#allocation2 + $0x30] sm:$0xff]  }
 0x17b   : > { %652 = vst.msk [vmem:[#allocation2 + $0x38] sm:$0xf] %vm637_vm6, %v612_v15  ;;  %v2041_v10 = vpop.f32.mrf.mxu0  ;;  %2646 = vmatmul.mubr.msk.bf16.gmra.mxu1 %vm1975_vm12, %v2791_v1  ;;  %v2118_v15 = vadd.s32 40, %v4240_v38 }
 0x17c   : > { %2649 = vmatprep.mubr.msk.bf16.mxu1 %vm2897_vm3, %v2896_v60  ;;  %v2383_v34 = vsel %vm2329_vm7, %v2041_v10, 0.0 }
 0x17d   : > { %v780_v21 = vpop.permute.xlu1 %779  ;;  %v2623_v56 = vpop.f32.mrf.mxu0  ;;  %v2424_v44 = vmul.f32 %v2383_v34, %v2041_v10 }
 0x17e   : > { %819 = vst.msk [vmem:[#allocation2 + $0x3c] sm:$0xf] %vm803_vm8, %v780_v21  ;;  %v778_v29 = vpop.permute.xlu0 %777  ;;  %v4310_v10 = vmul.u32.u64.low 3817748708, %v2118_v15  ;;  %v4311_v21 = vmul.u32.u64.high 3817748708, %v2118_v15, %v4310_v10 }
 0x17f   : > { %818 = vst.msk [vmem:[#allocation2 + $0x38] sm:$0xf] %vm803_vm8, %v778_v29  ;;  %v2044_v39 = vpop.f32.mrf.mxu0 }
 0x180   : > { %v2384_v14 = vsel %vm2330_vm15, %v2044_v39, 0.0 }
 0x181   : > { %v1063_v11 = vpop.permute.xlu1 %1062  ;;  %v2401_v46 = vadd.f32 %v2384_v14, %v2383_v34  ;;  %v2425_v48 = vmul.f32 %v2384_v14, %v2044_v39  ;;  %v2624_v6 = vpop.f32.mrf.mxu0 }
 0x182   : > { %1102 = vst.msk [vmem:[#allocation2 + $0x3c] sm:$0xf] %vm1086_vm9, %v1063_v11  ;;  %v1061_v8 = vpop.permute.xlu0 %1060 }
 0x183   : > { %1101 = vst.msk [vmem:[#allocation2 + $0x38] sm:$0xf] %vm1086_vm9, %v1061_v8  ;;  %v2442_v52 = vadd.f32 %v2425_v48, %v2424_v44  ;;  %v2192_v44 = vshrl.u32 %v4311_v21, 4 }
 0x185   : > { %v1232_v5 = vpop.permute.xlu1 %1231  ;;  %v2193_v48 = vmul.u32 18, %v2192_v44 }
 0x186   : > { %1271 = vst.msk [vmem:[#allocation2 + $0x3c] sm:$0xf] %vm1255_vm13, %v1232_v5  ;;  %v1230_v25 = vpop.permute.xlu0 %1229 }
 0x187   : > { %1270 = vst.msk [vmem:[#allocation2 + $0x38] sm:$0xf] %vm1255_vm13, %v1230_v25  ;;  %v2194_v6 = vsub.s32 %v2118_v15, %v2193_v48 }
 0x189   : > { %v1398_v63 = vpop.permute.xlu1 %1397 }
 0x18a   : > { %1437 = vst.msk [vmem:[#allocation2 + $0x3c] sm:$0xf] %vm1421_vm14, %v1398_v63  ;;  %v1396_v61 = vpop.permute.xlu0 %1395 }
 0x18b   : > { %1436 = vst.msk [vmem:[#allocation2 + $0x38] sm:$0xf] %vm1421_vm14, %v1396_v61 }
 0x18d   : > { %v1681_v27 = vpop.permute.xlu1 %1680 }
 0x18e   : > { %1720 = vst.msk [vmem:[#allocation2 + $0x3c] sm:$0xf] %vm4484_vm1, %v1681_v27  ;;  %v1679_v18 = vpop.permute.xlu0 %1678 }
 0x18f   : > { %1719 = vst.msk [vmem:[#allocation2 + $0x38] sm:$0xf] %vm4489_vm10, %v1679_v18  ;;  %v2119_v18 = vadd.s32 48, %v4240_v38 }
 0x191   : > { %v1850_v43 = vpop.permute.xlu1 %1849 }
 0x192   : > { %1889 = vst.msk [vmem:[#allocation2 + $0x3c] sm:$0xf] %vm4490_vm2, %v1850_v43  ;;  %v1848_v24 = vpop.permute.xlu0 %1847  ;;  %v4322_v55 = vmul.u32.u64.low 3817748708, %v2119_v18  ;;  %v4323_v43 = vmul.u32.u64.high 3817748708, %v2119_v18, %v4322_v55 }
 0x193   : > { %1888 = vst.msk [vmem:[#allocation2 + $0x38] sm:$0xf] %vm4491_vm4, %v1848_v24  ;;  %v2120_v24 = vadd.s32 56, %v4240_v38 }
 0x195   : > { %v449_v35 = vpop.permute.xlu1 %448  ;;  %v4326_v3 = vmul.u32.u64.low 3817748708, %v2120_v24  ;;  %v4327_v53 = vmul.u32.u64.high 3817748708, %v2120_v24, %v4326_v3 }
 0x196   : > { %486 = vst.msk [vmem:[#allocation2 + $0x44] sm:$0xf] %vm468_vm5, %v449_v35  ;;  %v447_v28 = vpop.permute.xlu0 %446  ;;  %v2203_v35 = vshrl.u32 %v4323_v43, 4 }
 0x197   : > { %485 = vst.msk [vmem:[#allocation2 + $0x40] sm:$0xf] %vm468_vm5, %v447_v28  ;;  %vm2332_vm5 = vcmp.lt.s32.totalorder %v2172_v0, 16  ;;  %v2214_v2 = vshrl.u32 %v4327_v53, 4 }
 0x198   : > { %v2204_v28 = vmul.u32 18, %v2203_v35 }
 0x199   : > { %v618_v42 = vpop.permute.xlu1 %617 }
 0x19a   : > { %655 = vst.msk [vmem:[#allocation2 + $0x44] sm:$0xf] %vm637_vm6, %v618_v42  ;;  %v616_v33 = vpop.permute.xlu0 %615  ;;  %v2792_v41 = vld [vmem:[#allocation2 + $0x38] sm:$0xff]   ;;  %v2205_v9 = vsub.s32 %v2119_v18, %v2204_v28  ;;  %v2215_v42 = vmul.u32 18, %v2214_v2 }
 0x19b   : > { %654 = vst.msk [vmem:[#allocation2 + $0x40] sm:$0xf] %vm637_vm6, %v616_v33  ;;  %v2049_v59 = vpop.f32.mrf.mxu0  ;;  %2650 = vmatmul.mubr.msk.bf16.gmra.mxu1 %vm1975_vm12, %v2792_v41  ;;  %vm4493_vm6 = vmmov %vm4484_vm1 }
 0x19c   : > { %v2385_v17 = vsel %vm2331_vm11, %v2049_v59, 0.0  ;;  %2653 = vmatprep.mubr.msk.bf16.mxu1 %vm2897_vm3, %v2896_v60  ;;  %v2117_v60 = vadd.s32 32, %v4240_v38  ;;  %vm4492_vm3 = vmmov %vm4484_vm1  ;;  %v2216_v33 = vsub.s32 %v2120_v24, %v2215_v42 }
 0x19d   : > { %v784_v57 = vpop.permute.xlu1 %783  ;;  %v2402_v30 = vadd.f32 %v2401_v46, %v2385_v17  ;;  %v2426_v58 = vmul.f32 %v2385_v17, %v2049_v59  ;;  %v2627_v62 = vpop.f32.mrf.mxu0 }
 0x19e   : > { %821 = vst.msk [vmem:[#allocation2 + $0x44] sm:$0xf] %vm803_vm8, %v784_v57  ;;  %v782_v49 = vpop.permute.xlu0 %781  ;;  %v4304_v36 = vmul.u32.u64.low 3817748708, %v2117_v60  ;;  %v4305_v22 = vmul.u32.u64.high 3817748708, %v2117_v60, %v4304_v36 }
 0x19f   : > { %820 = vst.msk [vmem:[#allocation2 + $0x40] sm:$0xf] %vm803_vm8, %v782_v49  ;;  %v2443_v16 = vadd.f32 %v2442_v52, %v2426_v58  ;;  %v2052_v13 = vpop.f32.mrf.mxu0  ;;  %vm4494_vm8 = vmmov %vm4481_vm0  ;;  %v2124_v36 = vadd.s32 88, %v4240_v38 }
 0x1a0   : > { %v2386_v12 = vsel %vm2332_vm5, %v2052_v13, 0.0  ;;  %v2181_v34 = vshrl.u32 %v4305_v22, 4 }
 0x1a1   : > { %v1067_v50 = vpop.permute.xlu1 %1066  ;;  %v2403_v4 = vadd.f32 %v2402_v30, %v2386_v12  ;;  %v2427_v37 = vmul.f32 %v2386_v12, %v2052_v13  ;;  %v2628_v26 = vpop.f32.mrf.mxu0  ;;  %v4344_v10 = vmul.u32.u64.low 3817748708, %v2124_v36  ;;  %v4345_v21 = vmul.u32.u64.high 3817748708, %v2124_v36, %v4344_v10 }
 0x1a2   : > { %1104 = vst.msk [vmem:[#allocation2 + $0x44] sm:$0xf] %vm1086_vm9, %v1067_v50  ;;  %v1065_v45 = vpop.permute.xlu0 %1064  ;;  %v2182_v11 = vmul.u32 18, %v2181_v34  ;;  %v2121_v26 = vadd.s32 64, %v4240_v38 }
 0x1a3   : > { %1103 = vst.msk [vmem:[#allocation2 + $0x40] sm:$0xf] %vm1086_vm9, %v1065_v45  ;;  %v2444_v7 = vadd.f32 %v2443_v16, %v2427_v37  ;;  %vm4495_vm9 = vmmov %vm4481_vm0  ;;  %vm2336_vm0 = vcmp.lt.s32.totalorder %v2216_v33, 16 }
 0x1a4   : > { %v2183_v46 = vsub.s32 %v2117_v60, %v2182_v11  ;;  %v2123_v60 = vadd.s32 80, %v4240_v38 }
 0x1a5   : > { %v1236_v51 = vpop.permute.xlu1 %1235 }
 0x1a6   : > { %1273 = vst.msk [vmem:[#allocation2 + $0x44] sm:$0xf] %vm1255_vm13, %v1236_v51  ;;  %v1234_v23 = vpop.permute.xlu0 %1233  ;;  %v4338_v22 = vmul.u32.u64.low 3817748708, %v2123_v60  ;;  %v4339_v15 = vmul.u32.u64.high 3817748708, %v2123_v60, %v4338_v22 }
 0x1a7   : > { %1272 = vst.msk [vmem:[#allocation2 + $0x40] sm:$0xf] %vm1255_vm13, %v1234_v23  ;;  %vm2333_vm13 = vcmp.lt.s32.totalorder %v2183_v46, 16  ;;  %v2122_v23 = vadd.s32 72, %v4240_v38 }
 0x1a9   : > { %v1402_v1 = vpop.permute.xlu1 %1401 }
 0x1aa   : > { %1439 = vst.msk [vmem:[#allocation2 + $0x44] sm:$0xf] %vm1421_vm14, %v1402_v1  ;;  %v1400_v40 = vpop.permute.xlu0 %1399 }
 0x1ab   : > { %1438 = vst.msk [vmem:[#allocation2 + $0x40] sm:$0xf] %vm1421_vm14, %v1400_v40  ;;  %vm2334_vm14 = vcmp.lt.s32.totalorder %v2194_v6, 16  ;;  %v4341_v1 = vmul.u32.u64.low 3817748708, %v2122_v23  ;;  %v4342_v40 = vmul.u32.u64.high 3817748708, %v2122_v23, %v4341_v1 }
 0x1ad   : > { %v1685_v29 = vpop.permute.xlu1 %1684 }
 0x1ae   : > { %1722 = vst.msk [vmem:[#allocation2 + $0x44] sm:$0xf] %vm4492_vm3, %v1685_v29  ;;  %v1683_v56 = vpop.permute.xlu0 %1682 }
 0x1af   : > { %1721 = vst.msk [vmem:[#allocation2 + $0x40] sm:$0xf] %vm4493_vm6, %v1683_v56  ;;  %v2247_v56 = vshrl.u32 %v4339_v15, 4 }
 0x1b1   : > { %v1854_v39 = vpop.permute.xlu1 %1853  ;;  %v2248_v11 = vmul.u32 18, %v2247_v56 }
 0x1b2   : > { %1891 = vst.msk [vmem:[#allocation2 + $0x44] sm:$0xf] %vm4494_vm8, %v1854_v39  ;;  %v1852_v14 = vpop.permute.xlu0 %1851  ;;  %v2236_v39 = vshrl.u32 %v4342_v40, 4  ;;  %vm4496_vm8 = vcmask 1040384  }
 0x1b3   : > { %1890 = vst.msk [vmem:[#allocation2 + $0x40] sm:$0xf] %vm4495_vm9, %v1852_v14  ;;  %v2258_v14 = vshrl.u32 %v4345_v21, 4 }
 0x1b4   : > { %v2237_v46 = vmul.u32 18, %v2236_v39 }
 0x1b5   : > { %v2259_v48 = vmul.u32 18, %v2258_v14 }
 0x1b6   : > { %v2238_v6 = vsub.s32 %v2122_v23, %v2237_v46 }
 0x1b8   : > { %vm2338_vm1 = vcmp.lt.s32.totalorder %v2238_v6, 16 }
 0x1ba   : > { %v2793_v8 = vld [vmem:[#allocation2 + $0x40] sm:$0xff]  }
 0x1bb   : > { %v2057_v20 = vpop.f32.mrf.mxu0  ;;  %2654 = vmatmul.mubr.msk.bf16.gmra.mxu1 %vm1975_vm12, %v2793_v8  ;;  %vm2335_vm12 = vcmp.lt.s32.totalorder %v2205_v9, 16  ;;  %v2249_v8 = vsub.s32 %v2123_v60, %v2248_v11 }
 0x1bc   : > { %v2387_v52 = vsel %vm2333_vm13, %v2057_v20, 0.0 }
 0x1bd   : > { %v2404_v5 = vadd.f32 %v2403_v4, %v2387_v52  ;;  %v2428_v25 = vmul.f32 %v2387_v52, %v2057_v20  ;;  %v2631_v47 = vpop.f32.mrf.mxu0  ;;  %v2260_v20 = vsub.s32 %v2124_v36, %v2259_v48  ;;  %vm2339_vm15 = vcmp.lt.s32.totalorder %v2249_v8, 16 }
 0x1be   : > { %v2130_v36 = vadd.s32 136, %v4240_v38 }
 0x1bf   : > { %v2445_v54 = vadd.f32 %v2444_v7, %v2428_v25  ;;  %v2060_v31 = vpop.f32.mrf.mxu0  ;;  %v4333_v7 = vmul.u32.u64.low 3817748708, %v2121_v26  ;;  %v4334_v51 = vmul.u32.u64.high 3817748708, %v2121_v26, %v4333_v7  ;;  %vm2340_vm10 = vcmp.lt.s32.totalorder %v2260_v20, 16 }
 0x1c0   : > { %v2388_v63 = vsel %vm2334_vm14, %v2060_v31, 0.0  ;;  %v4376_v10 = vmul.u32.u64.low 3817748708, %v2130_v36  ;;  %v4377_v21 = vmul.u32.u64.high 3817748708, %v2130_v36, %v4376_v10 }
 0x1c1   : > { %v2405_v61 = vadd.f32 %v2404_v5, %v2388_v63  ;;  %v2429_v32 = vmul.f32 %v2388_v63, %v2060_v31  ;;  %v2632_v19 = vpop.f32.mrf.mxu0  ;;  %v2225_v29 = vshrl.u32 %v4334_v51, 4 }
 0x1c2   : > { %v2324_v48 = vshrl.u32 %v4377_v21, 4 }
 0x1c3   : > { %v2446_v27 = vadd.f32 %v2445_v54, %v2429_v32  ;;  %v2226_v34 = vmul.u32 18, %v2225_v29 }
 0x1c5   : > { %v2227_v44 = vsub.s32 %v2121_v26, %v2226_v34 }
 0x1c7   : > { %vm2337_vm7 = vcmp.lt.s32.totalorder %v2227_v44, 16 }
 0x1f7   : > { %v2065_v41 = vpop.f32.mrf.mxu0 }
 0x1f8   : > { %v2389_v0 = vsel %vm2335_vm12, %v2065_v41, 0.0 }
 0x1f9   : > { %v2406_v59 = vadd.f32 %v2405_v61, %v2389_v0  ;;  %v2430_v17 = vmul.f32 %v2389_v0, %v2065_v41  ;;  %v2635_v57 = vpop.f32.mrf.mxu0  ;;  %v2125_v0 = vadd.s32 96, %v4240_v38 }
 0x1fa   : > { %v2126_v57 = vadd.s32 104, %v4240_v38 }
 0x1fb   : > { %v2447_v30 = vadd.f32 %v2446_v27, %v2430_v17  ;;  %v2068_v58 = vpop.f32.mrf.mxu0  ;;  %v2081_v49 = vpop.f32.mrf.mxu1 }
 0x1fc   : > { %v2390_v62 = vsel %vm2336_vm0, %v2068_v58, 0.0  ;;  %v2393_v61 = vsel %vm2339_vm15, %v2081_v49, 0.0 }
 0x1fd   : > { %v2407_v16 = vadd.f32 %v2406_v59, %v2390_v62  ;;  %v2431_v13 = vmul.f32 %v2390_v62, %v2068_v58  ;;  %v2636_v12 = vpop.f32.mrf.mxu0  ;;  %v2643_v50 = vpop.f32.mrf.mxu1  ;;  %v2434_v3 = vmul.f32 %v2393_v61, %v2081_v49  ;;  %v2127_v58 = vadd.s32 112, %v4240_v38 }
 0x1fe   : > { %v4352_v59 = vmul.u32.u64.low 3817748708, %v2125_v0  ;;  %v4353_v17 = vmul.u32.u64.high 3817748708, %v2125_v0, %v4352_v59  ;;  %v2128_v49 = vadd.s32 120, %v4240_v38 }
 0x1ff   : > { %v2448_v4 = vadd.f32 %v2447_v30, %v2431_v13  ;;  %v2084_v37 = vpop.f32.mrf.mxu1  ;;  %v4361_v12 = vmul.u32.u64.low 3817748708, %v2127_v58  ;;  %v4362_v50 = vmul.u32.u64.high 3817748708, %v2127_v58, %v4361_v12 }
 0x200   : > { %v2394_v24 = vsel %vm2340_vm10, %v2084_v37, 0.0  ;;  %v2269_v7 = vshrl.u32 %v4353_v17, 4 }
 0x201   : > { %v2644_v45 = vpop.f32.mrf.mxu1  ;;  %v2435_v2 = vmul.f32 %v2394_v24, %v2084_v37  ;;  %v2129_v37 = vadd.s32 128, %v4240_v38  ;;  %v2291_v1 = vshrl.u32 %v4362_v50, 4 }
 0x202   : > { %v4365_v45 = vmul.u32.u64.low 3817748708, %v2128_v49  ;;  %v4366_v26 = vmul.u32.u64.high 3817748708, %v2128_v49, %v4365_v45  ;;  %v2270_v22 = vmul.u32 18, %v2269_v7 }
 0x203   : > { %v4369_v51 = vmul.u32.u64.low 3817748708, %v2129_v37  ;;  %v4370_v23 = vmul.u32.u64.high 3817748708, %v2129_v37, %v4369_v51  ;;  %v2292_v34 = vmul.u32 18, %v2291_v1 }
 0x204   : > { %v2302_v40 = vshrl.u32 %v4366_v26, 4  ;;  %v2271_v29 = vsub.s32 %v2125_v0, %v2270_v22 }
 0x205   : > { %v2313_v39 = vshrl.u32 %v4370_v23, 4  ;;  %v2293_v44 = vsub.s32 %v2127_v58, %v2292_v34 }
 0x206   : > { %v2303_v14 = vmul.u32 18, %v2302_v40  ;;  %vm2341_vm2 = vcmp.lt.s32.totalorder %v2271_v29, 16 }
 0x207   : > { %v2314_v38 = vmul.u32 18, %v2313_v39  ;;  %vm2343_vm11 = vcmp.lt.s32.totalorder %v2293_v44, 16 }
 0x208   : > { %v2304_v46 = vsub.s32 %v2128_v49, %v2303_v14 }
 0x209   : > { %v2315_v6 = vsub.s32 %v2129_v37, %v2314_v38 }
 0x20a   : > { %vm2344_vm5 = vcmp.lt.s32.totalorder %v2304_v46, 16 }
 0x20b   : > { %vm2345_vm3 = vcmp.lt.s32.totalorder %v2315_v6, 16 }
 0x237   : > { %v2073_v52 = vpop.f32.mrf.mxu0 }
 0x238   : > { %v2391_v5 = vsel %vm2337_vm7, %v2073_v52, 0.0 }
 0x239   : > { %v2432_v25 = vmul.f32 %v2391_v5, %v2073_v52  ;;  %v2639_v47 = vpop.f32.mrf.mxu0  ;;  %v2408_v54 = vadd.f32 %v2407_v16, %v2391_v5  ;;  %v4358_v16 = vmul.u32.u64.low 3817748708, %v2126_v57  ;;  %v4359_v13 = vmul.u32.u64.high 3817748708, %v2126_v57, %v4358_v16 }
 0x23a   : > { %v2325_v5 = vmul.u32 18, %v2324_v48 }
 0x23b   : > { %v2076_v31 = vpop.f32.mrf.mxu0  ;;  %v2089_v63 = vpop.f32.mrf.mxu1  ;;  %v2449_v19 = vadd.f32 %v2448_v4, %v2432_v25  ;;  %v2280_v15 = vshrl.u32 %v4359_v13, 4 }
 0x23c   : > { %v2392_v32 = vsel %vm2338_vm1, %v2076_v31, 0.0  ;;  %v2395_v8 = vsel %vm2341_vm2, %v2089_v63, 0.0 }
 0x23d   : > { %v2409_v27 = vadd.f32 %v2408_v54, %v2392_v32  ;;  %v2433_v18 = vmul.f32 %v2392_v32, %v2076_v31  ;;  %v2640_v55 = vpop.f32.mrf.mxu0  ;;  %v2647_v43 = vpop.f32.mrf.mxu1  ;;  %v2281_v56 = vmul.u32 18, %v2280_v15  ;;  %v2436_v52 = vmul.f32 %v2395_v8, %v2089_v63 }
 0x23f   : > { %v2410_v53 = vadd.f32 %v2409_v27, %v2393_v61  ;;  %v2450_v35 = vadd.f32 %v2449_v19, %v2433_v18  ;;  %v2092_v28 = vpop.f32.mrf.mxu1  ;;  %v2282_v11 = vsub.s32 %v2126_v57, %v2281_v56  ;;  %v2326_v27 = vsub.s32 %v2130_v36, %v2325_v5 }
 0x241   : > { %v2451_v9 = vadd.f32 %v2450_v35, %v2434_v3  ;;  %v2411_v42 = vadd.f32 %v2410_v53, %v2394_v24  ;;  %v2648_v33 = vpop.f32.mrf.mxu1  ;;  %vm2342_vm4 = vcmp.lt.s32.totalorder %v2282_v11, 16  ;;  %vm2346_vm6 = vcmp.lt.s32.totalorder %v2326_v27, 16 }
 0x242   : > { %v2396_v25 = vsel %vm2342_vm4, %v2092_v28, 0.0 }
 0x243   : > { %v2452_v41 = vadd.f32 %v2451_v9, %v2435_v2  ;;  %v2412_v20 = vadd.f32 %v2411_v42, %v2395_v8  ;;  %v2437_v32 = vmul.f32 %v2396_v25, %v2092_v28 }
 0x245   : > { %v2453_v54 = vadd.f32 %v2452_v41, %v2436_v52  ;;  %v2413_v61 = vadd.f32 %v2412_v20, %v2396_v25 }
 0x247   : > { %v2454_v18 = vadd.f32 %v2453_v54, %v2437_v32 }
 0x25b   : > { %v2097_v30 = vpop.f32.mrf.mxu1 }
 0x25c   : > { %v2397_v47 = vsel %vm2343_vm11, %v2097_v30, 0.0 }
 0x25d   : > { %v2651_v62 = vpop.f32.mrf.mxu1  ;;  %v2438_v19 = vmul.f32 %v2397_v47, %v2097_v30  ;;  %v2414_v55 = vadd.f32 %v2413_v61, %v2397_v47 }
 0x25f   : > { %v2100_v4 = vpop.f32.mrf.mxu1  ;;  %v2455_v53 = vadd.f32 %v2454_v18, %v2438_v19 }
 0x260   : > { %v2398_v31 = vsel %vm2344_vm5, %v2100_v4, 0.0 }
 0x261   : > { %v2652_v60 = vpop.f32.mrf.mxu1  ;;  %v2439_v43 = vmul.f32 %v2398_v31, %v2100_v4  ;;  %v2415_v35 = vadd.f32 %v2414_v55, %v2398_v31 }
 0x263   : > { %v2456_v9 = vadd.f32 %v2455_v53, %v2439_v43 }
 0x27b   : > { %v2105_v24 = vpop.f32.mrf.mxu1 }
 0x27c   : > { %v2399_v3 = vsel %vm2345_vm3, %v2105_v24, 0.0 }
 0x27d   : > { %v2440_v63 = vmul.f32 %v2399_v3, %v2105_v24  ;;  %v2655_v2 = vpop.f32.mrf.mxu1  ;;  %v2416_v42 = vadd.f32 %v2415_v35, %v2399_v3 }
 0x27f   : > { %v2108_v33 = vpop.f32.mrf.mxu1  ;;  %v2457_v28 = vadd.f32 %v2456_v9, %v2440_v63 }
 0x280   : > { %v2400_v41 = vsel %vm2346_vm6, %v2108_v33, 0.0 }
 0x281   : > { %v2417_v0 = vadd.f32 %v2416_v42, %v2400_v41  ;;  %v2441_v59 = vmul.f32 %v2400_v41, %v2108_v33  ;;  %v2656_v17 = vpop.f32.mrf.mxu1 }
 0x283   : > { %v2418_v57 = vrot.slane %v2417_v0, 4  ;;  %v2458_v30 = vadd.f32 %v2457_v28, %v2441_v59 }
 0x285   : > { %v2419_v58 = vadd.f32 %v2418_v57, %v2417_v0  ;;  %v2459_v62 = vrot.slane %v2458_v30, 4 }
 0x287   : > { %v2420_v49 = vrot.slane %v2419_v58, 2  ;;  %v2460_v16 = vadd.f32 %v2459_v62, %v2458_v30 }
 0x289   : > { %v2421_v13 = vadd.f32 %v2420_v49, %v2419_v58  ;;  %v2461_v12 = vrot.slane %v2460_v16, 2 }
 0x28b   : > { %v2422_v50 = vrot.slane %v2421_v13, 1  ;;  %v2462_v4 = vadd.f32 %v2461_v12, %v2460_v16 }
 0x28d   : > { %v2463_v37 = vrot.slane %v2462_v4, 1  ;;  %v2423_v45 = vadd.f32 %v2422_v50, %v2421_v13 }
 0x28f   : > { %v2464_v26 = vadd.f32 %v2463_v37, %v2462_v4 }
 0x291   : > { %v2466_v60 = vsel %vm4496_vm8, %v2423_v45, %v2464_v26 }
 0x292   : > { %2467 = vst [vmem:[%s160_s25] sm:$0x3] %v2466_v60 }
 0x293   : > { %2807 = shalt.err (!%p2804_p7)
}
 0x294   : > { %s2808_s6 = scalar_lea.hbm %s4387_s30, 32  ;;  %s2812_s17 = scalar_lea.hbm %s4436_s2, 128 }
 0x295   : > { %p2809_p9 = scmp.ne.s32.totalorder %s4387_s30, %s2808_s6  ;;  %p2813_p12 = scmp.lt.s32.totalorder %s4387_s30, %s4436_s2 }
 0x296   : > { %p2814_p13 = scmp.lt.s32.totalorder %s2812_s17, %s2808_s6 }
 0x297   : > { %p2810_p10 = pnand %p2809_p9, %p2965_p3 }
 0x298   : > { %p2815_p0 = por %p2814_p13, %p2813_p12 }
 0x299   : > { %p2811_p11 = pneg %p2810_p10 }
 0x29b   : > { %p2816_p1 = pnand %p2815_p0, %p2811_p11 }
 0x29d   : > { %2819 = shalt.err (!%p2816_p1)
}
 0x29e   : > { %2701 = dma.vmem_to_hbm [thread:$0]  (%p2965_p3), %s2485_s26, 32, %s4387_s30, %s2469_s13  }
 0x29f PF: > { %p2707_p2 = scmp.ge.s32.totalorder %s2886_s16, 2  ;;  %s2496_s24 = sand.u32 1, %s2858_s9  }
 0x2a0   : > { %s2497_s25 = scalar_lea.sflag [#allocation4], %s2496_s24 }
 0x2a1   : > { %p2704_p4 = pnand %p2707_p2, %p2974_p8 }
 0x2a3   : > { %p2705_p5 = pneg %p2704_p4 }
 0x2a5   : > { %2853 = dma.done.wait (%p2705_p5), %s2497_s25, 32  }
 0x2a6   : > { %2855 = vsyncadd (%p2705_p5), %s2497_s25, 4294967264  ;;  %s15_s16 = sadd.s32 1, %s2886_s16   ;;  %s4497_s9 = smov %s2862_s10 }
 0x2a7   : > { %p12_p6 = scmp.ge.s32.totalorder %s15_s16, 6   ;;  %s4498_s10 = smov %s2866_s11 }
 0x2a8   : > { %s4499_s11 = smov %s2983_s27  ;;  %s4500_s12 = smov %s2878_s14 }
 0x2a9   : > { %s4501_s13 = smov %s2882_s15  ;;  %s4502_s14 = smov %s4505_s19 }
 0x2aa   : > { %s4503_s15 = smov %s4509_s20  ;;  %14 = sbr.rel (!%p12_p6) target bundleno = 5 (0x5), region = 63 }
 0x2af   :  { %2502 = vsyncpa [#allocation4], 1 }
 0x2b0   :  { %2504 = vsyncpa [#allocation4 + $0x1], 1 }

</bundles_post_ra>
